<compile_context>
chip_gen: v6e
topology: v6e:2x2x1
jax: 0.10.0
libtpu: 0.0.40
codegen_flags: <defaults>
</compile_context>

<pallas_src>
import jax
import jax.numpy as jnp
from jax import lax
from jax.experimental import pallas as pl
from jax.experimental.pallas import tpu as pltpu


def _round_up(n, m):
    return ((n + m - 1) // m) * m


def _lstm_recurrence_kernel(x_ref, wih_ref, whh_ref, b_ref, len_ref, keep_ref,
                            out_ref, gates_ref, h_ref, c_ref):
    # x_ref:    [Tc*Bp, D]   (bf16) one time-chunk, time-major rows
    # wih_ref:  [D, 4Hp]     (bf16) gate-blocked (i|f|g|o), each gate Hp lanes
    # whh_ref:  [Hp, 4Hp]    (bf16)
    # b_ref:    [1, 4Hp]     (f32)  b_ih + b_hh, gate-blocked
    # len_ref:  [Bp, 1]      (i32)
    # keep_ref: [Bp, 1]      (f32)  1.0 where lengths == max(lengths) else 0.0
    # out_ref:  [Bp, Hp]     (f32)
    # gates_ref:[Tc*Bp, 4Hp] (f32 scratch)   h_ref/c_ref: [Bp, Hp] (f32 scratch)
    Hp = whh_ref.shape[0]
    Bp = len_ref.shape[0]
    Tc = x_ref.shape[0] // Bp
    chunk = pl.program_id(0)

    @pl.when(chunk == 0)
    def _init():
        h_ref[...] = jnp.zeros_like(h_ref)
        c_ref[...] = jnp.zeros_like(c_ref)

    # Hoisted input projection: one big MXU matmul per chunk, bias folded in.
    gates_ref[...] = (
        jnp.dot(x_ref[...], wih_ref[...], preferred_element_type=jnp.float32)
        + b_ref[...])

    whh = whh_ref[...]            # resident bf16 weights for the whole chunk
    lengths = len_ref[...]        # [Bp, 1] int32
    t0 = chunk * Tc

    def step(t, carry):
        h, c = carry
        gx = gates_ref[pl.ds(t * Bp, Bp), :]                      # [Bp, 4Hp] f32
        gates = gx + jnp.dot(h.astype(whh.dtype), whh,
                             preferred_element_type=jnp.float32)
        i = jax.nn.sigmoid(gates[:, 0 * Hp:1 * Hp])               # lane-aligned slabs
        f = jax.nn.sigmoid(gates[:, 1 * Hp:2 * Hp])
        g = jnp.tanh(gates[:, 2 * Hp:3 * Hp])
        o = jax.nn.sigmoid(gates[:, 3 * Hp:4 * Hp])
        c_new = f * c + i * g
        h_new = o * jnp.tanh(c_new)
        valid = (t0 + t) < lengths                                # [Bp, 1] bool
        h = jnp.where(valid, h_new, h)
        c = jnp.where(valid, c_new, c)
        return h, c

    h, c = lax.fori_loop(0, Tc, step, (h_ref[...], c_ref[...]), unroll=True)
    h_ref[...] = h
    c_ref[...] = c

    @pl.when(chunk == pl.num_programs(0) - 1)
    def _finalize():
        # pad_packed_sequence + x[:, -1, :]: zero for sequences shorter than max(lengths).
        out_ref[...] = h * keep_ref[...]


def _pack_gate_cols(w, H, Hp):
    """[4H, In] PyTorch-layout weight -> [In, 4Hp], each gate's H cols left-aligned in Hp."""
    wt = jnp.transpose(w)                                  # [In, 4H]
    blocks = []
    for g in range(4):                                     # PyTorch gate order i, f, g, o
        blk = wt[:, g * H:(g + 1) * H]
        blocks.append(jnp.pad(blk, ((0, 0), (0, Hp - H))))
    return jnp.concatenate(blocks, axis=1)                 # [In, 4Hp]


def init_lstm_params(key, input_size, hidden_size):
    """Deterministic init matching nn.LSTM parameter shapes (U(-1/sqrt(H), 1/sqrt(H)))."""
    k = 1.0 / float(hidden_size) ** 0.5
    k0, k1, k2, k3 = jax.random.split(key, 4)
    w_ih = jax.random.uniform(k0, (4 * hidden_size, input_size), jnp.float32, -k, k)
    w_hh = jax.random.uniform(k1, (4 * hidden_size, hidden_size), jnp.float32, -k, k)
    b_ih = jax.random.uniform(k2, (4 * hidden_size,), jnp.float32, -k, k)
    b_hh = jax.random.uniform(k3, (4 * hidden_size,), jnp.float32, -k, k)
    return w_ih, w_hh, b_ih, b_hh


def feat_extractor_lstm(x, lengths, params, input_size, hidden_size,
                        *, time_chunk=4, matmul_dtype=jnp.bfloat16):
    w_ih, w_hh, b_ih, b_hh = params
    if input_size == 1 and x.ndim == 2:
        x = x[..., None]                      # mirrors x.unsqueeze(-1)
    x = x.astype(jnp.float32)                 # mirrors x.float()
    B, T, D = x.shape
    H = hidden_size

    Bp = _round_up(B, 16)                     # sublane-friendly (f32: 8, bf16: 16)
    Hp = _round_up(H, 128)                    # lane-aligned gate slabs, unmasked output stores
    Tc = min(time_chunk, T)
    Tp = _round_up(T, Tc)

    # Time-major, padded, flattened to [Tp*Bp, D] so the per-chunk projection is a plain 2-D matmul.
    x_tm = jnp.transpose(x, (1, 0, 2))
    x_tm = jnp.pad(x_tm, ((0, Tp - T), (0, Bp - B), (0, 0)))
    x2d = x_tm.reshape(Tp * Bp, D).astype(matmul_dtype)

    wih_p = _pack_gate_cols(w_ih, H, Hp).astype(matmul_dtype)                     # [D, 4Hp]
    whh_p = jnp.pad(_pack_gate_cols(w_hh, H, Hp),
                    ((0, Hp - H), (0, 0))).astype(matmul_dtype)                   # [Hp, 4Hp]
    bias_p = jnp.pad((b_ih + b_hh).reshape(4, H),
                     ((0, 0), (0, Hp - H))).reshape(1, 4 * Hp).astype(jnp.float32)

    lens = lengths.astype(jnp.int32).reshape(B)
    keep = (lens == jnp.max(lens)).astype(jnp.float32)      # precomputed in the wrapper
    lens_p = jnp.pad(lens, (0, Bp - B)).reshape(Bp, 1)      # padded rows: length 0 -> frozen
    keep_p = jnp.pad(keep, (0, Bp - B)).reshape(Bp, 1)      # padded rows: keep 0

    out = pl.pallas_call(
        _lstm_recurrence_kernel,
        out_shape=jax.ShapeDtypeStruct((Bp, Hp), jnp.float32),
        grid=(Tp // Tc,),
        in_specs=[
            pl.BlockSpec((Tc * Bp, D), lambda t: (t, 0)),      # stream x chunk-by-chunk
            pl.BlockSpec((D, 4 * Hp), lambda t: (0, 0)),       # weights stay resident
            pl.BlockSpec((Hp, 4 * Hp), lambda t: (0, 0)),
            pl.BlockSpec((1, 4 * Hp), lambda t: (0, 0)),
            pl.BlockSpec((Bp, 1), lambda t: (0, 0)),
            pl.BlockSpec((Bp, 1), lambda t: (0, 0)),
        ],
        out_specs=pl.BlockSpec((Bp, Hp), lambda t: (0, 0)),
        scratch_shapes=[
            pltpu.VMEM((Tc * Bp, 4 * Hp), jnp.float32),        # precomputed input gates
            pltpu.VMEM((Bp, Hp), jnp.float32),                 # h carried across chunks
            pltpu.VMEM((Bp, Hp), jnp.float32),                 # c carried across chunks
        ],
        compiler_params=pltpu.CompilerParams(
            dimension_semantics=("arbitrary",)),
    )(x2d, wih_p, whh_p, bias_p, lens_p, keep_p)
    return out[:B, :H]


def _reference(x, lengths, params):
    """Pure-JAX f32 reference of the PyTorch forward for correctness checking."""
    w_ih, w_hh, b_ih, b_hh = params
    H = w_hh.shape[1]
    B, T, D = x.shape
    h = jnp.zeros((B, H), jnp.float32)
    c = jnp.zeros((B, H), jnp.float32)
    for t in range(T):
        gates = x[:, t] @ w_ih.T + h @ w_hh.T + b_ih + b_hh
        i, f, g, o = jnp.split(gates, 4, axis=-1)
        i, f, g, o = jax.nn.sigmoid(i), jax.nn.sigmoid(f), jnp.tanh(g), jax.nn.sigmoid(o)
        c_new = f * c + i * g
        h_new = o * jnp.tanh(c_new)
        valid = (t < lengths)[:, None]
        h = jnp.where(valid, h_new, h)
        c = jnp.where(valid, c_new, c)
    keep = (lengths == jnp.max(lengths))[:, None]
    return jnp.where(keep, h, 0.0)


if __name__ == "__main__":
    input_size = 8
    hidden_size = 32
    B, T = 4, 8

    key = jax.random.PRNGKey(0)
    kp, kx = jax.random.split(key)
    params = init_lstm_params(kp, input_size, hidden_size)

    x = jax.random.normal(kx, (B, T, input_size), jnp.float32)
    lengths = jnp.array([8, 5, 8, 3], dtype=jnp.int32)   # max length == T

    out = feat_extractor_lstm(x, lengths, params, input_size, hidden_size, time_chunk=4)
    out = jax.block_until_ready(out)

    ref = _reference(x.astype(jnp.float32), lengths, params)
    assert out.shape == (B, hidden_size)
    max_err = float(jnp.max(jnp.abs(out - ref)))
    # bf16 MXU inputs (f32 accumulate / f32 gate math) -> relaxed tolerance vs f32 reference.
    assert jnp.allclose(out, ref, rtol=2e-2, atol=2e-2), f"mismatch vs reference, max_err={max_err}"
    print("KERNEL_OK")
</pallas_src>

<mosaic_0001>
module attributes {stable_mosaic.version = 11 : i64} {
  func.func @_lstm_recurrence_kernel(%arg0: i32, %arg1: memref<64x8xbf16, #tpu.memory_space<vmem>>, %arg2: memref<8x512xbf16, #tpu.memory_space<vmem>>, %arg3: memref<128x512xbf16, #tpu.memory_space<vmem>>, %arg4: memref<1x512xf32, #tpu.memory_space<vmem>>, %arg5: memref<16x1xi32, #tpu.memory_space<vmem>>, %arg6: memref<16x1xf32, #tpu.memory_space<vmem>>, %arg7: memref<16x128xf32, #tpu.memory_space<vmem>>, %arg8: memref<64x512xf32, #tpu.memory_space<vmem>>, %arg9: memref<16x128xf32, #tpu.memory_space<vmem>>, %arg10: memref<16x128xf32, #tpu.memory_space<vmem>>) attributes {dimension_semantics = [#tpu.dimension_semantics<arbitrary>], iteration_bounds = array<i64: 2>, scalar_prefetch = 0 : i64, scratch_operands = 3 : i64, tpu.core_type = #tpu.core_type<tc>, window_params = [{transform_indices = @transform_0, window_bounds = array<i64: 64, 8>}, {pipeline_mode = #tpu.pipeline_mode<synchronous>, transform_indices = @transform_1, window_bounds = array<i64: 8, 512>}, {pipeline_mode = #tpu.pipeline_mode<synchronous>, transform_indices = @transform_2, window_bounds = array<i64: 128, 512>}, {pipeline_mode = #tpu.pipeline_mode<synchronous>, transform_indices = @transform_3, window_bounds = array<i64: 1, 512>}, {pipeline_mode = #tpu.pipeline_mode<synchronous>, transform_indices = @transform_4, window_bounds = array<i64: 16, 1>}, {pipeline_mode = #tpu.pipeline_mode<synchronous>, transform_indices = @transform_5, window_bounds = array<i64: 16, 1>}, {pipeline_mode = #tpu.pipeline_mode<synchronous>, transform_indices = @transform_6, window_bounds = array<i64: 16, 128>}]} {
    %c0_i32 = arith.constant 0 : i32
    %0 = arith.cmpi eq, %arg0, %c0_i32 : i32
    %1 = arith.extui %0 : i1 to i32
    %c0_i32_0 = arith.constant 0 : i32
    %2 = arith.cmpi ne, %1, %c0_i32_0 : i32
    scf.if %2 {
      %cst_47 = arith.constant 0.000000e+00 : f32
      %180 = vector.broadcast %cst_47 : f32 to vector<16x128xf32>
      %c0_48 = arith.constant 0 : index
      %c0_49 = arith.constant 0 : index
      %181 = vector.load %arg9[%c0_48, %c0_49] : memref<16x128xf32, #tpu.memory_space<vmem>>, vector<16x128xf32>
      tpu.vector_store %arg9[%c0_48, %c0_49], %180 {strides = array<i32>} : memref<16x128xf32, #tpu.memory_space<vmem>>, vector<16x128xf32>,
      %cst_50 = arith.constant 0.000000e+00 : f32
      %182 = vector.broadcast %cst_50 : f32 to vector<16x128xf32>
      %c0_51 = arith.constant 0 : index
      %c0_52 = arith.constant 0 : index
      %183 = vector.load %arg10[%c0_51, %c0_52] : memref<16x128xf32, #tpu.memory_space<vmem>>, vector<16x128xf32>
      tpu.vector_store %arg10[%c0_51, %c0_52], %182 {strides = array<i32>} : memref<16x128xf32, #tpu.memory_space<vmem>>, vector<16x128xf32>,
    } else {
    }
    %c0 = arith.constant 0 : index
    %c0_1 = arith.constant 0 : index
    %3 = vector.load %arg1[%c0, %c0_1] : memref<64x8xbf16, #tpu.memory_space<vmem>>, vector<64x8xbf16>
    %c0_2 = arith.constant 0 : index
    %c0_3 = arith.constant 0 : index
    %4 = vector.load %arg2[%c0_2, %c0_3] : memref<8x512xbf16, #tpu.memory_space<vmem>>, vector<8x512xbf16>
    %cst = arith.constant dense<0.000000e+00> : vector<64x512xf32>
    %5 = tpu.matmul %3, %4, %cst {dimension_numbers = #tpu.dot_dimension_numbers<[1], [0], [0], [1], [0, 0, 1, 1], [], []>} : vector<64x8xbf16>, vector<8x512xbf16>, vector<64x512xf32> -> vector<64x512xf32>
    %c0_4 = arith.constant 0 : index
    %c0_5 = arith.constant 0 : index
    %6 = vector.load %arg4[%c0_4, %c0_5] : memref<1x512xf32, #tpu.memory_space<vmem>>, vector<1x512xf32>
    %7 = vector.broadcast %6 : vector<1x512xf32> to vector<64x512xf32>
    %8 = arith.addf %5, %7 : vector<64x512xf32>
    %c0_6 = arith.constant 0 : index
    %c0_7 = arith.constant 0 : index
    %9 = vector.load %arg8[%c0_6, %c0_7] : memref<64x512xf32, #tpu.memory_space<vmem>>, vector<64x512xf32>
    tpu.vector_store %arg8[%c0_6, %c0_7], %8 {strides = array<i32>} : memref<64x512xf32, #tpu.memory_space<vmem>>, vector<64x512xf32>,
    %c0_8 = arith.constant 0 : index
    %c0_9 = arith.constant 0 : index
    %10 = vector.load %arg3[%c0_8, %c0_9] : memref<128x512xbf16, #tpu.memory_space<vmem>>, vector<128x512xbf16>
    %c0_10 = arith.constant 0 : index
    %c0_11 = arith.constant 0 : index
    %11 = vector.load %arg5[%c0_10, %c0_11] : memref<16x1xi32, #tpu.memory_space<vmem>>, vector<16x1xi32>
    %c4_i32 = arith.constant 4 : i32
    %12 = arith.muli %arg0, %c4_i32 : i32
    %c0_12 = arith.constant 0 : index
    %c0_13 = arith.constant 0 : index
    %13 = vector.load %arg9[%c0_12, %c0_13] : memref<16x128xf32, #tpu.memory_space<vmem>>, vector<16x128xf32>
    %c0_14 = arith.constant 0 : index
    %c0_15 = arith.constant 0 : index
    %14 = vector.load %arg10[%c0_14, %c0_15] : memref<16x128xf32, #tpu.memory_space<vmem>>, vector<16x128xf32>
    %c0_i32_16 = arith.constant 0 : i32
    %c16_i32 = arith.constant 16 : i32
    %15 = arith.muli %c0_i32_16, %c16_i32 : i32
    %16 = arith.index_cast %15 : i32 to index
    %c0_17 = arith.constant 0 : index
    %17 = vector.load %arg8[%16, %c0_17] : memref<64x512xf32, #tpu.memory_space<vmem>>, vector<16x512xf32>
    %18 = arith.truncf %13 : vector<16x128xf32> to vector<16x128xbf16>
    %cst_18 = arith.constant dense<0.000000e+00> : vector<16x512xf32>
    %19 = tpu.matmul %18, %10, %cst_18 {dimension_numbers = #tpu.dot_dimension_numbers<[1], [0], [0], [1], [0, 0, 1, 1], [], []>} : vector<16x128xbf16>, vector<128x512xbf16>, vector<16x512xf32> -> vector<16x512xf32>
    %20 = arith.addf %17, %19 : vector<16x512xf32>
    %21 = vector.extract_strided_slice %20 {offsets = [0, 0], sizes = [16, 128], strides = [1, 1]} : vector<16x512xf32> to vector<16x128xf32>
    %22 = arith.negf %21 : vector<16x128xf32>
    %23 = math.exp %22 : vector<16x128xf32>
    %cst_19 = arith.constant 1.000000e+00 : f32
    %24 = vector.broadcast %cst_19 : f32 to vector<16x128xf32>
    %25 = arith.addf %24, %23 : vector<16x128xf32>
    %26 = arith.divf %24, %25 : vector<16x128xf32>
    %27 = vector.extract_strided_slice %20 {offsets = [0, 128], sizes = [16, 128], strides = [1, 1]} : vector<16x512xf32> to vector<16x128xf32>
    %28 = arith.negf %27 : vector<16x128xf32>
    %29 = math.exp %28 : vector<16x128xf32>
    %cst_20 = arith.constant 1.000000e+00 : f32
    %30 = vector.broadcast %cst_20 : f32 to vector<16x128xf32>
    %31 = arith.addf %30, %29 : vector<16x128xf32>
    %32 = arith.divf %30, %31 : vector<16x128xf32>
    %33 = vector.extract_strided_slice %20 {offsets = [0, 256], sizes = [16, 128], strides = [1, 1]} : vector<16x512xf32> to vector<16x128xf32>
    %34 = math.tanh %33 : vector<16x128xf32>
    %35 = vector.extract_strided_slice %20 {offsets = [0, 384], sizes = [16, 128], strides = [1, 1]} : vector<16x512xf32> to vector<16x128xf32>
    %36 = arith.negf %35 : vector<16x128xf32>
    %37 = math.exp %36 : vector<16x128xf32>
    %cst_21 = arith.constant 1.000000e+00 : f32
    %38 = vector.broadcast %cst_21 : f32 to vector<16x128xf32>
    %39 = arith.addf %38, %37 : vector<16x128xf32>
    %40 = arith.divf %38, %39 : vector<16x128xf32>
    %41 = arith.mulf %32, %14 : vector<16x128xf32>
    %42 = arith.mulf %26, %34 : vector<16x128xf32>
    %43 = arith.addf %41, %42 : vector<16x128xf32>
    %44 = math.tanh %43 : vector<16x128xf32>
    %45 = arith.mulf %40, %44 : vector<16x128xf32>
    %46 = arith.addi %12, %c0_i32_16 : i32
    %47 = vector.broadcast %46 : i32 to vector<16x1xi32>
    %48 = arith.cmpi slt, %47, %11 : vector<16x1xi32>
    %49 = vector.shape_cast %48 : vector<16x1xi1> to vector<16x1xi1>
    %50 = vector.broadcast %49 : vector<16x1xi1> to vector<16x128xi1>
    %51 = arith.select %50, %45, %13 : vector<16x128xi1>, vector<16x128xf32>
    %52 = vector.shape_cast %48 : vector<16x1xi1> to vector<16x1xi1>
    %53 = vector.broadcast %52 : vector<16x1xi1> to vector<16x128xi1>
    %54 = arith.select %53, %43, %14 : vector<16x128xi1>, vector<16x128xf32>
    %c1_i32 = arith.constant 1 : i32
    %c16_i32_22 = arith.constant 16 : i32
    %55 = arith.muli %c1_i32, %c16_i32_22 : i32
    %56 = arith.index_cast %55 : i32 to index
    %c0_23 = arith.constant 0 : index
    %57 = vector.load %arg8[%56, %c0_23] : memref<64x512xf32, #tpu.memory_space<vmem>>, vector<16x512xf32>
    %58 = arith.truncf %51 : vector<16x128xf32> to vector<16x128xbf16>
    %cst_24 = arith.constant dense<0.000000e+00> : vector<16x512xf32>
    %59 = tpu.matmul %58, %10, %cst_24 {dimension_numbers = #tpu.dot_dimension_numbers<[1], [0], [0], [1], [0, 0, 1, 1], [], []>} : vector<16x128xbf16>, vector<128x512xbf16>, vector<16x512xf32> -> vector<16x512xf32>
    %60 = arith.addf %57, %59 : vector<16x512xf32>
    %61 = vector.extract_strided_slice %60 {offsets = [0, 0], sizes = [16, 128], strides = [1, 1]} : vector<16x512xf32> to vector<16x128xf32>
    %62 = arith.negf %61 : vector<16x128xf32>
    %63 = math.exp %62 : vector<16x128xf32>
    %cst_25 = arith.constant 1.000000e+00 : f32
    %64 = vector.broadcast %cst_25 : f32 to vector<16x128xf32>
    %65 = arith.addf %64, %63 : vector<16x128xf32>
    %66 = arith.divf %64, %65 : vector<16x128xf32>
    %67 = vector.extract_strided_slice %60 {offsets = [0, 128], sizes = [16, 128], strides = [1, 1]} : vector<16x512xf32> to vector<16x128xf32>
    %68 = arith.negf %67 : vector<16x128xf32>
    %69 = math.exp %68 : vector<16x128xf32>
    %cst_26 = arith.constant 1.000000e+00 : f32
    %70 = vector.broadcast %cst_26 : f32 to vector<16x128xf32>
    %71 = arith.addf %70, %69 : vector<16x128xf32>
    %72 = arith.divf %70, %71 : vector<16x128xf32>
    %73 = vector.extract_strided_slice %60 {offsets = [0, 256], sizes = [16, 128], strides = [1, 1]} : vector<16x512xf32> to vector<16x128xf32>
    %74 = math.tanh %73 : vector<16x128xf32>
    %75 = vector.extract_strided_slice %60 {offsets = [0, 384], sizes = [16, 128], strides = [1, 1]} : vector<16x512xf32> to vector<16x128xf32>
    %76 = arith.negf %75 : vector<16x128xf32>
    %77 = math.exp %76 : vector<16x128xf32>
    %cst_27 = arith.constant 1.000000e+00 : f32
    %78 = vector.broadcast %cst_27 : f32 to vector<16x128xf32>
    %79 = arith.addf %78, %77 : vector<16x128xf32>
    %80 = arith.divf %78, %79 : vector<16x128xf32>
    %81 = arith.mulf %72, %54 : vector<16x128xf32>
    %82 = arith.mulf %66, %74 : vector<16x128xf32>
    %83 = arith.addf %81, %82 : vector<16x128xf32>
    %84 = math.tanh %83 : vector<16x128xf32>
    %85 = arith.mulf %80, %84 : vector<16x128xf32>
    %86 = arith.addi %12, %c1_i32 : i32
    %87 = vector.broadcast %86 : i32 to vector<16x1xi32>
    %88 = arith.cmpi slt, %87, %11 : vector<16x1xi32>
    %89 = vector.shape_cast %88 : vector<16x1xi1> to vector<16x1xi1>
    %90 = vector.broadcast %89 : vector<16x1xi1> to vector<16x128xi1>
    %91 = arith.select %90, %85, %51 : vector<16x128xi1>, vector<16x128xf32>
    %92 = vector.shape_cast %88 : vector<16x1xi1> to vector<16x1xi1>
    %93 = vector.broadcast %92 : vector<16x1xi1> to vector<16x128xi1>
    %94 = arith.select %93, %83, %54 : vector<16x128xi1>, vector<16x128xf32>
    %c2_i32 = arith.constant 2 : i32
    %c16_i32_28 = arith.constant 16 : i32
    %95 = arith.muli %c2_i32, %c16_i32_28 : i32
    %96 = arith.index_cast %95 : i32 to index
    %c0_29 = arith.constant 0 : index
    %97 = vector.load %arg8[%96, %c0_29] : memref<64x512xf32, #tpu.memory_space<vmem>>, vector<16x512xf32>
    %98 = arith.truncf %91 : vector<16x128xf32> to vector<16x128xbf16>
    %cst_30 = arith.constant dense<0.000000e+00> : vector<16x512xf32>
    %99 = tpu.matmul %98, %10, %cst_30 {dimension_numbers = #tpu.dot_dimension_numbers<[1], [0], [0], [1], [0, 0, 1, 1], [], []>} : vector<16x128xbf16>, vector<128x512xbf16>, vector<16x512xf32> -> vector<16x512xf32>
    %100 = arith.addf %97, %99 : vector<16x512xf32>
    %101 = vector.extract_strided_slice %100 {offsets = [0, 0], sizes = [16, 128], strides = [1, 1]} : vector<16x512xf32> to vector<16x128xf32>
    %102 = arith.negf %101 : vector<16x128xf32>
    %103 = math.exp %102 : vector<16x128xf32>
    %cst_31 = arith.constant 1.000000e+00 : f32
    %104 = vector.broadcast %cst_31 : f32 to vector<16x128xf32>
    %105 = arith.addf %104, %103 : vector<16x128xf32>
    %106 = arith.divf %104, %105 : vector<16x128xf32>
    %107 = vector.extract_strided_slice %100 {offsets = [0, 128], sizes = [16, 128], strides = [1, 1]} : vector<16x512xf32> to vector<16x128xf32>
    %108 = arith.negf %107 : vector<16x128xf32>
    %109 = math.exp %108 : vector<16x128xf32>
    %cst_32 = arith.constant 1.000000e+00 : f32
    %110 = vector.broadcast %cst_32 : f32 to vector<16x128xf32>
    %111 = arith.addf %110, %109 : vector<16x128xf32>
    %112 = arith.divf %110, %111 : vector<16x128xf32>
    %113 = vector.extract_strided_slice %100 {offsets = [0, 256], sizes = [16, 128], strides = [1, 1]} : vector<16x512xf32> to vector<16x128xf32>
    %114 = math.tanh %113 : vector<16x128xf32>
    %115 = vector.extract_strided_slice %100 {offsets = [0, 384], sizes = [16, 128], strides = [1, 1]} : vector<16x512xf32> to vector<16x128xf32>
    %116 = arith.negf %115 : vector<16x128xf32>
    %117 = math.exp %116 : vector<16x128xf32>
    %cst_33 = arith.constant 1.000000e+00 : f32
    %118 = vector.broadcast %cst_33 : f32 to vector<16x128xf32>
    %119 = arith.addf %118, %117 : vector<16x128xf32>
    %120 = arith.divf %118, %119 : vector<16x128xf32>
    %121 = arith.mulf %112, %94 : vector<16x128xf32>
    %122 = arith.mulf %106, %114 : vector<16x128xf32>
    %123 = arith.addf %121, %122 : vector<16x128xf32>
    %124 = math.tanh %123 : vector<16x128xf32>
    %125 = arith.mulf %120, %124 : vector<16x128xf32>
    %126 = arith.addi %12, %c2_i32 : i32
    %127 = vector.broadcast %126 : i32 to vector<16x1xi32>
    %128 = arith.cmpi slt, %127, %11 : vector<16x1xi32>
    %129 = vector.shape_cast %128 : vector<16x1xi1> to vector<16x1xi1>
    %130 = vector.broadcast %129 : vector<16x1xi1> to vector<16x128xi1>
    %131 = arith.select %130, %125, %91 : vector<16x128xi1>, vector<16x128xf32>
    %132 = vector.shape_cast %128 : vector<16x1xi1> to vector<16x1xi1>
    %133 = vector.broadcast %132 : vector<16x1xi1> to vector<16x128xi1>
    %134 = arith.select %133, %123, %94 : vector<16x128xi1>, vector<16x128xf32>
    %c3_i32 = arith.constant 3 : i32
    %c16_i32_34 = arith.constant 16 : i32
    %135 = arith.muli %c3_i32, %c16_i32_34 : i32
    %136 = arith.index_cast %135 : i32 to index
    %c0_35 = arith.constant 0 : index
    %137 = vector.load %arg8[%136, %c0_35] : memref<64x512xf32, #tpu.memory_space<vmem>>, vector<16x512xf32>
    %138 = arith.truncf %131 : vector<16x128xf32> to vector<16x128xbf16>
    %cst_36 = arith.constant dense<0.000000e+00> : vector<16x512xf32>
    %139 = tpu.matmul %138, %10, %cst_36 {dimension_numbers = #tpu.dot_dimension_numbers<[1], [0], [0], [1], [0, 0, 1, 1], [], []>} : vector<16x128xbf16>, vector<128x512xbf16>, vector<16x512xf32> -> vector<16x512xf32>
    %140 = arith.addf %137, %139 : vector<16x512xf32>
    %141 = vector.extract_strided_slice %140 {offsets = [0, 0], sizes = [16, 128], strides = [1, 1]} : vector<16x512xf32> to vector<16x128xf32>
    %142 = arith.negf %141 : vector<16x128xf32>
    %143 = math.exp %142 : vector<16x128xf32>
    %cst_37 = arith.constant 1.000000e+00 : f32
    %144 = vector.broadcast %cst_37 : f32 to vector<16x128xf32>
    %145 = arith.addf %144, %143 : vector<16x128xf32>
    %146 = arith.divf %144, %145 : vector<16x128xf32>
    %147 = vector.extract_strided_slice %140 {offsets = [0, 128], sizes = [16, 128], strides = [1, 1]} : vector<16x512xf32> to vector<16x128xf32>
    %148 = arith.negf %147 : vector<16x128xf32>
    %149 = math.exp %148 : vector<16x128xf32>
    %cst_38 = arith.constant 1.000000e+00 : f32
    %150 = vector.broadcast %cst_38 : f32 to vector<16x128xf32>
    %151 = arith.addf %150, %149 : vector<16x128xf32>
    %152 = arith.divf %150, %151 : vector<16x128xf32>
    %153 = vector.extract_strided_slice %140 {offsets = [0, 256], sizes = [16, 128], strides = [1, 1]} : vector<16x512xf32> to vector<16x128xf32>
    %154 = math.tanh %153 : vector<16x128xf32>
    %155 = vector.extract_strided_slice %140 {offsets = [0, 384], sizes = [16, 128], strides = [1, 1]} : vector<16x512xf32> to vector<16x128xf32>
    %156 = arith.negf %155 : vector<16x128xf32>
    %157 = math.exp %156 : vector<16x128xf32>
    %cst_39 = arith.constant 1.000000e+00 : f32
    %158 = vector.broadcast %cst_39 : f32 to vector<16x128xf32>
    %159 = arith.addf %158, %157 : vector<16x128xf32>
    %160 = arith.divf %158, %159 : vector<16x128xf32>
    %161 = arith.mulf %152, %134 : vector<16x128xf32>
    %162 = arith.mulf %146, %154 : vector<16x128xf32>
    %163 = arith.addf %161, %162 : vector<16x128xf32>
    %164 = math.tanh %163 : vector<16x128xf32>
    %165 = arith.mulf %160, %164 : vector<16x128xf32>
    %166 = arith.addi %12, %c3_i32 : i32
    %167 = vector.broadcast %166 : i32 to vector<16x1xi32>
    %168 = arith.cmpi slt, %167, %11 : vector<16x1xi32>
    %169 = vector.shape_cast %168 : vector<16x1xi1> to vector<16x1xi1>
    %170 = vector.broadcast %169 : vector<16x1xi1> to vector<16x128xi1>
    %171 = arith.select %170, %165, %131 : vector<16x128xi1>, vector<16x128xf32>
    %172 = vector.shape_cast %168 : vector<16x1xi1> to vector<16x1xi1>
    %173 = vector.broadcast %172 : vector<16x1xi1> to vector<16x128xi1>
    %174 = arith.select %173, %163, %134 : vector<16x128xi1>, vector<16x128xf32>
    %c4_i32_40 = arith.constant 4 : i32
    %c0_41 = arith.constant 0 : index
    %c0_42 = arith.constant 0 : index
    %175 = vector.load %arg9[%c0_41, %c0_42] : memref<16x128xf32, #tpu.memory_space<vmem>>, vector<16x128xf32>
    tpu.vector_store %arg9[%c0_41, %c0_42], %171 {strides = array<i32>} : memref<16x128xf32, #tpu.memory_space<vmem>>, vector<16x128xf32>,
    %c0_43 = arith.constant 0 : index
    %c0_44 = arith.constant 0 : index
    %176 = vector.load %arg10[%c0_43, %c0_44] : memref<16x128xf32, #tpu.memory_space<vmem>>, vector<16x128xf32>
    tpu.vector_store %arg10[%c0_43, %c0_44], %174 {strides = array<i32>} : memref<16x128xf32, #tpu.memory_space<vmem>>, vector<16x128xf32>,
    %c1_i32_45 = arith.constant 1 : i32
    %177 = arith.cmpi eq, %arg0, %c1_i32_45 : i32
    %178 = arith.extui %177 : i1 to i32
    %c0_i32_46 = arith.constant 0 : i32
    %179 = arith.cmpi ne, %178, %c0_i32_46 : i32
    scf.if %179 {
      %c0_47 = arith.constant 0 : index
      %c0_48 = arith.constant 0 : index
      %180 = vector.load %arg6[%c0_47, %c0_48] : memref<16x1xf32, #tpu.memory_space<vmem>>, vector<16x1xf32>
      %181 = vector.broadcast %180 : vector<16x1xf32> to vector<16x128xf32>
      %182 = arith.mulf %171, %181 : vector<16x128xf32>
      %c0_49 = arith.constant 0 : index
      %c0_50 = arith.constant 0 : index
      %183 = vector.load %arg7[%c0_49, %c0_50] : memref<16x128xf32, #tpu.memory_space<vmem>>, vector<16x128xf32>
      tpu.vector_store %arg7[%c0_49, %c0_50], %182 {strides = array<i32>} : memref<16x128xf32, #tpu.memory_space<vmem>>, vector<16x128xf32>,
    } else {
    }
    return
  }
  func.func @transform_0(%arg0: i32) -> (i32, i32) {
    %c0_i32 = arith.constant 0 : i32
    %c0_i32_0 = arith.constant 0 : i32
    return %arg0, %c0_i32 : i32, i32
  }
  func.func @transform_1(%arg0: i32) -> (i32, i32) {
    %c0_i32 = arith.constant 0 : i32
    %c0_i32_0 = arith.constant 0 : i32
    %c0_i32_1 = arith.constant 0 : i32
    return %c0_i32, %c0_i32_0 : i32, i32
  }
  func.func @transform_2(%arg0: i32) -> (i32, i32) {
    %c0_i32 = arith.constant 0 : i32
    %c0_i32_0 = arith.constant 0 : i32
    %c0_i32_1 = arith.constant 0 : i32
    return %c0_i32, %c0_i32_0 : i32, i32
  }
  func.func @transform_3(%arg0: i32) -> (i32, i32) {
    %c0_i32 = arith.constant 0 : i32
    %c0_i32_0 = arith.constant 0 : i32
    %c0_i32_1 = arith.constant 0 : i32
    return %c0_i32, %c0_i32_0 : i32, i32
  }
  func.func @transform_4(%arg0: i32) -> (i32, i32) {
    %c0_i32 = arith.constant 0 : i32
    %c0_i32_0 = arith.constant 0 : i32
    %c0_i32_1 = arith.constant 0 : i32
    return %c0_i32, %c0_i32_0 : i32, i32
  }
  func.func @transform_5(%arg0: i32) -> (i32, i32) {
    %c0_i32 = arith.constant 0 : i32
    %c0_i32_0 = arith.constant 0 : i32
    %c0_i32_1 = arith.constant 0 : i32
    return %c0_i32, %c0_i32_0 : i32, i32
  }
  func.func @transform_6(%arg0: i32) -> (i32, i32) {
    %c0_i32 = arith.constant 0 : i32
    %c0_i32_0 = arith.constant 0 : i32
    %c0_i32_1 = arith.constant 0 : i32
    return %c0_i32, %c0_i32_0 : i32, i32
  }
}

</mosaic_0001>

<bundles_post_ra>
// kernel: tpu_custom_call.1
= control target key start
LH: loop header
LB: loop body
LE: loop exit
PB: predicated region body
PF: predicated region fallthrough
CT: control target
= control target key end

     0   :  { %11 = vsyncpa [#allocation6], 0  ;;  %s2414_s0 = inlined_call_operand.vmem [shape: bf16[128,8], index: 0, kind: input, shape index: {}]   ;;  %s2415_s1 = inlined_call_operand.vmem [shape: bf16[8,512], index: 1, kind: input, shape index: {}]   ;;  %s2416_s2 = inlined_call_operand.hbm [shape: bf16[128,512], index: 2, kind: input, shape index: {}]   ;;  %s2417_s3 = inlined_call_operand.vmem [shape: f32[1,512], index: 3, kind: input, shape index: {}]   ;;  %s2418_s4 = inlined_call_operand.vmem [shape: s32[16,1], index: 4, kind: input, shape index: {}]   ;;  %s2419_s5 = inlined_call_operand.vmem [shape: f32[16,1], index: 5, kind: input, shape index: {}]   ;;  %s2420_s6 = inlined_call_operand.hbm [shape: f32[16,128], index: 6, kind: output, shape index: {}]  }
   0x1   :  { %12 = vsyncpa [#allocation7], 0  ;;  %s1907_s21 = smov 0  }
   0x2 LB: > { %s1913_s22 = sadd.s32 4294967295, %s1861_s21   ;;  %p1489_p0 = scmp.ge.s32.totalorder %s1861_s21, 1  ;;  %s1861_s21 = sphi %s1907_s21, %s18_s21  }
   0x3   : > { %p175_p1 = scmp.lt.s32.totalorder %s1861_s21, 3  ;;  %s1863_s23 = smov [#allocation5]  }
   0x4   : > { %s190_s24 = sshll.u32 %s1863_s23, 4  ;;  %p1589_p4 = scmp.eq.s32.totalorder %s1913_s22, 0  ;;  %s191_s24 = int_to_ptr.vmem [resolvable:$true] %s190_s24 }
   0x5   : > { %p1918_p3 = pnand %p1489_p0, %p175_p1  ;;  %s1808_s26 = scalar_lea.vmem %s191_s24, 4096 }
   0x6   : > { %p1809_p8 = scmp.ne.s32.totalorder %s191_s24, %s1808_s26  ;;  %p1816_p11 = scmp.lt.s32.totalorder %s191_s24, %s191_s24 }
   0x7   : > { %p1585_p5 = pneg %p1918_p3  ;;  %p1817_p12 = scmp.lt.s32.totalorder %s1808_s26, %s1808_s26 }
   0x9   : > { %p1586_p6 = pnand %p1589_p4, %p1585_p5  ;;  %p1818_p13 = por %p1817_p12, %p1816_p11 }
   0xb   : > { %p1799_p7 = pneg %p1586_p6 }
   0xd   : > { %p1811_p9 = pnand %p1809_p8, %p1799_p7 }
   0xf   : > { %p1812_p10 = pneg %p1811_p9 }
  0x11   : > { %p1819_p2 = pnand %p1818_p13, %p1812_p10 }
  0x13   : > { %1822 = shalt.err (!%p1819_p2)
}
  0x14   : > { %s1864_s27 = smov 256   ;;  %s1865_s28 = smov 16  }
  0x15   : > { %1588 = dma.hbm_to_vmem [thread:$0]  (!%p1586_p6), %s2416_s2, 4096, %s191_s24, [#allocation6], %s1864_s27, %s1864_s27, %s1865_s28  }
  0x16   : > { %224 = sbr.rel (%p1918_p3) target bundleno = 1249 (0x4e1), region = 44 }
  0x1b   : > { %1852 = dma.done.wait (%p1589_p4), [#allocation6], 4096  }
  0x1c   : > { %1854 = vsyncadd (%p1589_p4), [#allocation6], 4294963200  ;;  %s1494_s7 = sshll.u32 %s1913_s22, 3  ;;  %p2424_p1 = scmp.ne.s32.totalorder %s1913_s22, 0 }
  0x1d   : > { %p250_p0 = scmp.lt.s32.totalorder %s1494_s7, 15 }
  0x1e   : > { %259 = sbr.rel (%p2424_p1) target bundleno = 38 (0x26), region = 52 }
  0x1f   : > { %s2471_s7 = smov (!%p250_p0, %s1494_s7), 15 }
  0x20   : > { %s1495_s8 = sshll.u32 %s2471_s7, 2 }
  0x21   : > { %s1940_s11 = scalar_lea.vmem %s2414_s0, %s1495_s8 }
  0x23   : > { %v1866_v0 = vmov 0.0  }
  0x24   : > { %260 = vst [vmem:[#allocation3] sm:$0xff] %v1866_v0  ;;  %261 = vst [vmem:[#allocation3 + $0x8] sm:$0xff] %v1866_v0 }
  0x25   : > { %262 = vst [vmem:[#allocation4 + $0x8] sm:$0xff] %v1866_v0  ;;  %263 = vst [vmem:[#allocation4] sm:$0xff] %v1866_v0 }
  0x26 PF: > { %v272_v1 = vld [vmem:[%s2415_s1] sm:$0xff]  ;;  %vm339_vm0 = vcmask 1043456   ;;  %v273_v2 = vld [vmem:[%s2415_s1 + $0x8] sm:$0xff]  ;;  %v2421_v7 = vmov 0   ;;  %vm326_vm1 = vcmask 64512   ;;  %v1642_v30 = vld [vmem:[%s1940_s11 + $0x10] sm:$0xff]   ;;  %v276_v63 = vlaneseq }
  0x27   : > { %v1502_v3 = vcombine.high %v272_v1, %v272_v1  ;;  %v1504_v4 = vcombine.high %v273_v2, %v273_v2  ;;  %v1501_v5 = vcombine.low %v272_v1, %v272_v1  ;;  %v1503_v6 = vcombine.low %v273_v2, %v273_v2  ;;  %384 = vmatprep.mubr.bf16.mxu0 %v2421_v7  ;;  %v1616_v8 = vld [vmem:[%s1940_s11] sm:$0xff]   ;;  %v1956_v12 = vld [vmem:[#allocation5 + $0xec] ss:$16 sps:$4 sm:$0xff]   ;;  %v1960_v14 = vld [vmem:[#allocation5 + $0xe8] ss:$16 sps:$4 sm:$0xff]   ;;  %s2028_s16 = sshll.u32 %s1913_s22, 2 }
  0x28   : > { %457 = vmatprep.mubr.bf16.mxu1 %v2421_v7  ;;  %v1953_v9 = vld [vmem:[#allocation5 + $0xe4] ss:$16 sps:$4 sm:$0xff]   ;;  %1610 = vset.pattern.permute.xlu0 %v2421_v7  ;;  %v1958_v13 = vld [vmem:[#allocation5 + $0xe0] ss:$16 sps:$4 sm:$0xff]   ;;  %v1966_v16 = vld [vmem:[#allocation5 + $0xcc] ss:$16 sps:$4 sm:$0xff]   ;;  %v880_v37 = vstv %s2028_s16 }
  0x29   : > { %1505 = vmatprep.subr.msk.bf16.mxu0 %vm339_vm0, %v1502_v3  ;;  %1510 = vmatprep.subr.msk.bf16.mxu1 %vm339_vm0, %v1504_v4  ;;  %v341_v10 = vsel %vm339_vm0, %v1501_v5, 0  ;;  %v347_v11 = vsel %vm339_vm0, %v1503_v6, 0  ;;  %v1964_v15 = vld [vmem:[#allocation5 + $0xc4] ss:$16 sps:$4 sm:$0xff]   ;;  %v1968_v17 = vld [vmem:[#allocation5 + $0xc0] ss:$16 sps:$4 sm:$0xff]  }
  0x2a   : > { %367 = vmatpush1.bf16.msra.mxu0 %v341_v10  ;;  %440 = vmatpush1.bf16.msra.mxu1 %v347_v11  ;;  %v1973_v18 = vld [vmem:[#allocation5 + $0xc8] ss:$16 sps:$4 sm:$0xff]   ;;  %v1977_v19 = vld [vmem:[#allocation5 + $0xa4] ss:$16 sps:$4 sm:$0xff]   ;;  %v1981_v20 = vld [vmem:[#allocation5 + $0xac] ss:$16 sps:$4 sm:$0xff]  }
  0x2b   : > { %738 = vmatprep.subr.bf16.mxu0 %v1953_v9  ;;  %781 = vmatprep.subr.bf16.mxu1 %v1956_v12  ;;  %v1629_v21 = vld [vmem:[%s1940_s11 + $0x8] sm:$0xff]   ;;  %v1986_v22 = vld [vmem:[#allocation5 + $0xa0] ss:$16 sps:$4 sm:$0xff]   ;;  %v1992_v24 = vld [vmem:[#allocation5 + $0x84] ss:$16 sps:$4 sm:$0xff]   ;;  %s1217_s23 = sadd.s32 2, %s2028_s16 }
  0x2c   : > { %1611 = vset.pattern.permute.xlu1 %v2421_v7  ;;  %v1990_v23 = vld [vmem:[#allocation5 + $0xa8] ss:$16 sps:$4 sm:$0xff]   ;;  %v1996_v25 = vld [vmem:[#allocation5 + $0x8c] ss:$16 sps:$4 sm:$0xff]   ;;  %v2002_v26 = vld [vmem:[#allocation5 + $0x80] ss:$16 sps:$4 sm:$0xff]   ;;  %v2078_v49 = vstv %s1217_s23 }
  0x2d   : > { %1506 = vmatmul.mubr.msk.bf16.vlgmr.msra.gmra.mxu0 %vm326_vm1, %v1616_v8  ;;  %1511 = vmatmul.mubr.msk.bf16.vlgmr.msra.gmra.mxu1 %vm326_vm1, %v1616_v8  ;;  %v2004_v27 = vld [vmem:[#allocation5 + $0x88] ss:$16 sps:$4 sm:$0xff]   ;;  %v2006_v28 = vld [vmem:[#allocation5 + $0x64] ss:$16 sps:$4 sm:$0xff]   ;;  %v2010_v29 = vld [vmem:[#allocation5 + $0x6c] ss:$16 sps:$4 sm:$0xff]  }
  0x2e   : > { %739 = vmatpush1.bf16.msra.mxu0 %v1958_v13  ;;  %782 = vmatpush1.bf16.msra.mxu1 %v1960_v14  ;;  %v2015_v31 = vld [vmem:[#allocation5 + $0x60] ss:$16 sps:$4 sm:$0xff]   ;;  %v2017_v32 = vld [vmem:[#allocation5 + $0x68] ss:$16 sps:$4 sm:$0xff]   ;;  %v2021_v33 = vld [vmem:[#allocation5 + $0x44] ss:$16 sps:$4 sm:$0xff]  }
  0x2f   : > { %740 = vmatprep.subr.bf16.mxu0 %v1964_v15  ;;  %783 = vmatprep.subr.bf16.mxu1 %v1966_v16  ;;  %v2025_v34 = vld [vmem:[#allocation5 + $0x4c] ss:$16 sps:$4 sm:$0xff]   ;;  %v2032_v35 = vld [vmem:[#allocation5 + $0x40] ss:$16 sps:$4 sm:$0xff]   ;;  %v2036_v36 = vld [vmem:[#allocation5 + $0x48] ss:$16 sps:$4 sm:$0xff]  }
  0x30   : > { %394 = vmatprep.mubr.bf16.mxu0 %v2421_v7  ;;  %467 = vmatprep.mubr.bf16.mxu1 %v2421_v7  ;;  %v2041_v38 = vld [vmem:[#allocation5 + $0x24] ss:$16 sps:$4 sm:$0xff]   ;;  %v2043_v39 = vld [vmem:[#allocation5 + $0x2c] ss:$16 sps:$4 sm:$0xff]   ;;  %v2061_v43 = vld [vmem:[#allocation5 + $0x20] ss:$16 sps:$4 sm:$0xff]  }
  0x31   : > { %v2050_v40 = vld [vmem:[%s2418_s4] sm:$0xff]  ;;  %v1655_v41 = vld [vmem:[%s1940_s11 + $0x18] sm:$0xff]   ;;  %v2057_v42 = vld [vmem:[%s2418_s4 + $0x8] sm:$0xff]  ;;  %s1386_s24 = sadd.s32 3, %s2028_s16  ;;  %s1048_s25 = sadd.s32 1, %s2028_s16  ;;  %v277_v0 = vshrl.u32 %v276_v63, 7 }
  0x32   : > { %741 = vmatpush1.bf16.msra.mxu0 %v1968_v17  ;;  %784 = vmatpush1.bf16.msra.mxu1 %v1973_v18  ;;  %vm881_vm2 = vcmp.lt.s32.totalorder %v880_v37, %v2050_v40  ;;  %v2063_v44 = vld [vmem:[#allocation5 + $0x28] ss:$16 sps:$4 sm:$0xff]   ;;  %v2069_v46 = vld [vmem:[#allocation5 + $0x4] ss:$16 sps:$4 sm:$0xff]   ;;  %v2071_v47 = vld [vmem:[#allocation5 + $0xc] ss:$16 sps:$4 sm:$0xff]   ;;  %vm882_vm3 = vcmp.lt.s32.totalorder %v880_v37, %v2057_v42  ;;  %vm1219_vm4 = vcmp.lt.s32.totalorder %v2078_v49, %v2050_v40  ;;  %v1387_v55 = vstv %s1386_s24 }
  0x33   : > { %742 = vmatprep.subr.bf16.mxu0 %v1977_v19  ;;  %785 = vmatprep.subr.bf16.mxu1 %v1981_v20  ;;  %v883_v45 = vsel %vm881_vm2, 1, %v2421_v7  ;;  %v2076_v48 = vld [vmem:[#allocation5] ss:$16 sps:$4 sm:$0xff]   ;;  %v2082_v50 = vld [vmem:[#allocation5 + $0x8] ss:$16 sps:$4 sm:$0xff]   ;;  %v884_v53 = vsel %vm882_vm3, 1, %v2421_v7  ;;  %vm1388_vm5 = vcmp.lt.s32.totalorder %v1387_v55, %v2050_v40  ;;  %v1049_v58 = vstv %s1048_s25 }
  0x34   : > { %886 = vperm.xlu0 %1610, %v883_v45   ;;  %v2084_v51 = vld [vmem:[#allocation3] sm:$0xff]  ;;  %v2086_v52 = vld [vmem:[#allocation3 + $0x8] sm:$0xff]  ;;  %v1221_v56 = vsel %vm1219_vm4, 1, %v2421_v7  ;;  %v1390_v57 = vsel %vm1388_vm5, 1, %v2421_v7  ;;  %vm1050_vm6 = vcmp.lt.s32.totalorder %v1049_v58, %v2050_v40  ;;  %vm1051_vm7 = vcmp.lt.s32.totalorder %v1049_v58, %v2057_v42  ;;  %p1572_p2 = scmp.ne.s32.totalorder %s1913_s22, 1 }
  0x35   : > { %1507 = vmatmul.mubr.msk.bf16.gmra.mxu0 %vm326_vm1, %v1629_v21  ;;  %1512 = vmatmul.mubr.msk.bf16.gmra.mxu1 %vm326_vm1, %v1629_v21  ;;  %v577_v54 = vpack.c.bf16 %v2086_v52, %v2084_v51  ;;  %v1052_v59 = vsel %vm1050_vm6, 1, %v2421_v7  ;;  %v1053_v60 = vsel %vm1051_vm7, 1, %v2421_v7  ;;  %vm1220_vm8 = vcmp.lt.s32.totalorder %v2078_v49, %v2057_v42  ;;  %v274_v8 = vld [vmem:[%s2417_s3] sm:$0xf] }
  0x36   : > { %743 = vmatpush1.bf16.msra.mxu0 %v1986_v22  ;;  %786 = vmatpush1.bf16.msra.mxu1 %v1990_v23  ;;  %v1222_v61 = vsel %vm1220_vm8, 1, %v2421_v7  ;;  %vm1389_vm9 = vcmp.lt.s32.totalorder %v1387_v55, %v2057_v42  ;;  %v278_v5 = vsub.s32 0, %v277_v0  ;;  %v286_v6 = vsub.s32 2, %v277_v0 }
  0x37   : > { %744 = vmatprep.subr.bf16.mxu0 %v1992_v24  ;;  %787 = vmatprep.subr.bf16.mxu1 %v1996_v25  ;;  %v1391_v62 = vsel %vm1389_vm9, 1, %v2421_v7  ;;  %v282_v21 = vsub.s32 1, %v277_v0 }
  0x38   : > { %404 = vmatprep.mubr.bf16.mxu0 %v2421_v7  ;;  %477 = vmatprep.mubr.bf16.mxu1 %v2421_v7  ;;  %v2168_v42 = vrot.slane %v274_v8, %v286_v6 }
  0x39   : > { %889 = vperm.xlu0 %1610, %v884_v53   ;;  %1055 = vperm.xlu1 %1611, %v1052_v59   ;;  %v283_v53 = vrot.slane %v274_v8, %v282_v21 }
  0x3a   : > { %745 = vmatpush1.bf16.msra.mxu0 %v2002_v26  ;;  %788 = vmatpush1.bf16.msra.mxu1 %v2004_v27 }
  0x3b   : > { %746 = vmatprep.subr.bf16.mxu0 %v2006_v28  ;;  %789 = vmatprep.subr.bf16.mxu1 %v2010_v29 }
  0x3d   : > { %1508 = vmatmul.mubr.msk.bf16.gmra.mxu0 %vm326_vm1, %v1642_v30  ;;  %1513 = vmatmul.mubr.msk.bf16.gmra.mxu1 %vm326_vm1, %v1642_v30  ;;  %v290_v30 = vsub.s32 3, %v277_v0 }
  0x3e   : > { %747 = vmatpush1.bf16.msra.mxu0 %v2015_v31  ;;  %790 = vmatpush1.bf16.msra.mxu1 %v2017_v32 }
  0x3f   : > { %748 = vmatprep.subr.bf16.mxu0 %v2021_v33  ;;  %791 = vmatprep.subr.bf16.mxu1 %v2025_v34 }
  0x40   : > { %414 = vmatprep.mubr.bf16.mxu0 %v2421_v7  ;;  %487 = vmatprep.mubr.bf16.mxu1 %v2421_v7 }
  0x41   : > { %1224 = vperm.xlu0 %1610, %v1221_v56   ;;  %1058 = vperm.xlu1 %1611, %v1053_v60  }
  0x42   : > { %749 = vmatpush1.bf16.msra.mxu0 %v2032_v35  ;;  %792 = vmatpush1.bf16.msra.mxu1 %v2036_v36 }
  0x43   : > { %750 = vmatprep.subr.bf16.mxu0 %v2041_v38  ;;  %793 = vmatprep.subr.bf16.mxu1 %v2043_v39 }
  0x45   : > { %1509 = vmatmul.mubr.msk.bf16.gmra.mxu0 %vm326_vm1, %v1655_v41  ;;  %1514 = vmatmul.mubr.msk.bf16.gmra.mxu1 %vm326_vm1, %v1655_v41  ;;  %v279_v41 = vrot.slane %v274_v8, %v278_v5 }
  0x46   : > { %751 = vmatpush1.bf16.msra.mxu0 %v2061_v43  ;;  %794 = vmatpush1.bf16.msra.mxu1 %v2063_v44 }
  0x47   : > { %752 = vmatprep.subr.bf16.mxu0 %v2069_v46  ;;  %795 = vmatprep.subr.bf16.mxu1 %v2071_v47 }
  0x48   : > { %770 = vmatprep.mubr.bf16.mxu0 %v2421_v7  ;;  %813 = vmatprep.mubr.bf16.mxu1 %v2421_v7 }
  0x49   : > { %1393 = vperm.xlu0 %1610, %v1390_v57   ;;  %1227 = vperm.xlu1 %1611, %v1222_v61  }
  0x4a   : > { %753 = vmatpush1.bf16.msra.mxu0 %v2076_v48  ;;  %796 = vmatpush1.bf16.msra.mxu1 %v2082_v50 }
  0x4b   : > { %906 = vmatprep.subr.bf16.mxu0 %v1953_v9  ;;  %949 = vmatprep.subr.bf16.mxu1 %v1956_v12 }
  0x4d   : > { %771 = vmatmul.mubr.bf16.vlgmr.msra.gmra.mxu0 %v577_v54  ;;  %814 = vmatmul.mubr.bf16.vlgmr.msra.gmra.mxu1 %v577_v54  ;;  %v2170_v54 = vrot.slane %v274_v8, %v290_v30 }
  0x4e   : > { %907 = vmatpush1.bf16.msra.mxu0 %v1958_v13  ;;  %950 = vmatpush1.bf16.msra.mxu1 %v1960_v14 }
  0x4f   : > { %908 = vmatprep.subr.bf16.mxu0 %v1964_v15  ;;  %951 = vmatprep.subr.bf16.mxu1 %v1966_v16 }
  0x50   : > { %938 = vmatprep.mubr.bf16.mxu0 %v2421_v7  ;;  %981 = vmatprep.mubr.bf16.mxu1 %v2421_v7 }
  0x51   : > { %1396 = vperm.xlu1 %1611, %v1391_v62  }
  0x52   : > { %909 = vmatpush1.bf16.msra.mxu0 %v1968_v17  ;;  %952 = vmatpush1.bf16.msra.mxu1 %v1973_v18 }
  0x53   : > { %910 = vmatprep.subr.bf16.mxu0 %v1977_v19  ;;  %953 = vmatprep.subr.bf16.mxu1 %v1981_v20 }
  0x56   : > { %911 = vmatpush1.bf16.msra.mxu0 %v1986_v22  ;;  %954 = vmatpush1.bf16.msra.mxu1 %v1990_v23 }
  0x57   : > { %912 = vmatprep.subr.bf16.mxu0 %v1992_v24  ;;  %955 = vmatprep.subr.bf16.mxu1 %v1996_v25 }
  0x5a   : > { %913 = vmatpush1.bf16.msra.mxu0 %v2002_v26  ;;  %956 = vmatpush1.bf16.msra.mxu1 %v2004_v27 }
  0x5b   : > { %914 = vmatprep.subr.bf16.mxu0 %v2006_v28  ;;  %957 = vmatprep.subr.bf16.mxu1 %v2010_v29 }
  0x5e   : > { %915 = vmatpush1.bf16.msra.mxu0 %v2015_v31  ;;  %958 = vmatpush1.bf16.msra.mxu1 %v2017_v32 }
  0x5f   : > { %916 = vmatprep.subr.bf16.mxu0 %v2021_v33  ;;  %959 = vmatprep.subr.bf16.mxu1 %v2025_v34 }
  0x62   : > { %917 = vmatpush1.bf16.msra.mxu0 %v2032_v35  ;;  %960 = vmatpush1.bf16.msra.mxu1 %v2036_v36 }
  0x63   : > { %918 = vmatprep.subr.bf16.mxu0 %v2041_v38  ;;  %961 = vmatprep.subr.bf16.mxu1 %v2043_v39 }
  0x66   : > { %919 = vmatpush1.bf16.msra.mxu0 %v2061_v43  ;;  %962 = vmatpush1.bf16.msra.mxu1 %v2063_v44 }
  0x67   : > { %920 = vmatprep.subr.bf16.mxu0 %v2069_v46  ;;  %963 = vmatprep.subr.bf16.mxu1 %v2071_v47 }
  0x6a   : > { %921 = vmatpush1.bf16.msra.mxu0 %v2076_v48  ;;  %964 = vmatpush1.bf16.msra.mxu1 %v2082_v50 }
  0x6b   : > { %1075 = vmatprep.subr.bf16.mxu0 %v1953_v9  ;;  %1118 = vmatprep.subr.bf16.mxu1 %v1956_v12 }
  0xed   : > { %v2149_v1 = vpop.f32.mrf.mxu0  ;;  %v2151_v2 = vpop.f32.mrf.mxu1 }
  0xef   : > { %v2153_v3 = vpop.f32.mrf.mxu0  ;;  %v2155_v4 = vpop.f32.mrf.mxu1 }
  0xf1   : > { %v2160_v10 = vpop.f32.mrf.mxu0  ;;  %v2162_v11 = vpop.f32.mrf.mxu1 }
  0xf3   : > { %v2164_v37 = vpop.f32.mrf.mxu0  ;;  %v2166_v40 = vpop.f32.mrf.mxu1 }
  0xf5   : > { %v396_v45 = vpop.f32.mrf.mxu0  ;;  %v469_v49 = vpop.f32.mrf.mxu1 }
  0xf6   : > { %v2172_v55 = vadd.f32 %v396_v45, %v279_v41  ;;  %v2175_v56 = vadd.f32 %v469_v49, %v2168_v42 }
  0xf7   : > { %v398_v57 = vpop.f32.mrf.mxu0  ;;  %v471_v58 = vpop.f32.mrf.mxu1 }
  0xf8   : > { %2425 = vst [vmem:[#allocation11_spill] sm:$0xff] %v2175_v56  ;;  %v2177_v59 = vadd.f32 %v398_v57, %v283_v53  ;;  %v2180_v60 = vadd.f32 %v471_v58, %v2170_v54 }
  0xf9   : > { %v400_v61 = vpop.f32.mrf.mxu0  ;;  %v473_v62 = vpop.f32.mrf.mxu1 }
  0xfa   : > { %2426 = vst [vmem:[#allocation12_spill] sm:$0xff] %v2180_v60  ;;  %v2182_v63 = vadd.f32 %v400_v61, %v279_v41  ;;  %v2185_v0 = vadd.f32 %v473_v62, %v2168_v42 }
  0xfb   : > { %v402_v5 = vpop.f32.mrf.mxu0  ;;  %v475_v6 = vpop.f32.mrf.mxu1 }
  0xfc   : > { %2427 = vst [vmem:[#allocation13_spill] sm:$0xff] %v2182_v63  ;;  %2428 = vst [vmem:[#allocation14_spill] sm:$0xff] %v2185_v0  ;;  %v2187_v8 = vadd.f32 %v402_v5, %v283_v53  ;;  %v2190_v21 = vadd.f32 %v475_v6, %v2170_v54 }
  0xfd   : > { %v406_v30 = vpop.f32.mrf.mxu0  ;;  %v479_v45 = vpop.f32.mrf.mxu1 }
  0xfe   : > { %2429 = vst [vmem:[#allocation15_spill] sm:$0xff] %v2187_v8  ;;  %2430 = vst [vmem:[#allocation16_spill] sm:$0xff] %v2190_v21  ;;  %v2192_v49 = vadd.f32 %v406_v30, %v279_v41  ;;  %v2195_v57 = vadd.f32 %v479_v45, %v2168_v42  ;;  %v393_v8 = vadd.f32 %v2164_v37, %v283_v53 }
  0xff   : > { %v408_v58 = vpop.f32.mrf.mxu0  ;;  %v481_v61 = vpop.f32.mrf.mxu1  ;;  %v466_v37 = vadd.f32 %v2166_v40, %v2170_v54 }
 0x100   : > { %2431 = vst [vmem:[#allocation17_spill] sm:$0xff] %v2192_v49  ;;  %2432 = vst [vmem:[#allocation18_spill] sm:$0xff] %v2195_v57  ;;  %v2197_v7 = vadd.f32 %v408_v58, %v283_v53  ;;  %v2200_v62 = vadd.f32 %v481_v61, %v2170_v54 }
 0x101   : > { %v410_v0 = vpop.f32.mrf.mxu0  ;;  %v483_v5 = vpop.f32.mrf.mxu1 }
 0x102   : > { %2433 = vst [vmem:[#allocation19_spill] sm:$0xff] %v2197_v7  ;;  %2434 = vst [vmem:[#allocation20_spill] sm:$0xff] %v2200_v62  ;;  %v2202_v56 = vadd.f32 %v410_v0, %v279_v41  ;;  %v2205_v6 = vadd.f32 %v483_v5, %v2168_v42 }
 0x103   : > { %v412_v21 = vpop.f32.mrf.mxu0  ;;  %v485_v30 = vpop.f32.mrf.mxu1 }
 0x104   : > { %2435 = vst [vmem:[#allocation21_spill] sm:$0xff] %v2202_v56  ;;  %2436 = vst [vmem:[#allocation22_spill] sm:$0xff] %v2205_v6  ;;  %v2207_v49 = vadd.f32 %v412_v21, %v283_v53  ;;  %v2210_v45 = vadd.f32 %v485_v30, %v2170_v54 }
 0x105   : > { %v416_v57 = vpop.f32.mrf.mxu0  ;;  %v489_v58 = vpop.f32.mrf.mxu1 }
 0x106   : > { %2437 = vst [vmem:[#allocation23_spill] sm:$0xff] %v2207_v49  ;;  %2438 = vst [vmem:[#allocation24_spill] sm:$0xff] %v2210_v45  ;;  %v2212_v7 = vadd.f32 %v416_v57, %v279_v41  ;;  %v2215_v61 = vadd.f32 %v489_v58, %v2168_v42 }
 0x107   : > { %v418_v62 = vpop.f32.mrf.mxu0  ;;  %v491_v0 = vpop.f32.mrf.mxu1 }
 0x108   : > { %2439 = vst [vmem:[#allocation25_spill] sm:$0xff] %v2212_v7  ;;  %2440 = vst [vmem:[#allocation26_spill] sm:$0xff] %v2215_v61  ;;  %v2217_v56 = vadd.f32 %v418_v62, %v283_v53  ;;  %v2220_v5 = vadd.f32 %v491_v0, %v2170_v54  ;;  %v387_v7 = vadd.f32 %v2149_v1, %v279_v41 }
 0x109   : > { %v420_v6 = vpop.f32.mrf.mxu0  ;;  %v493_v21 = vpop.f32.mrf.mxu1  ;;  %v389_v0 = vadd.f32 %v2153_v3, %v283_v53 }
 0x10a   : > { %2441 = vst [vmem:[#allocation27_spill] sm:$0xff] %v2217_v56  ;;  %2442 = vst [vmem:[#allocation28_spill] sm:$0xff] %v2220_v5  ;;  %v2222_v49 = vadd.f32 %v420_v6, %v279_v41  ;;  %v2225_v30 = vadd.f32 %v493_v21, %v2168_v42  ;;  %v391_v6 = vadd.f32 %v2160_v10, %v279_v41 }
 0x10b   : > { %v422_v45 = vpop.f32.mrf.mxu0  ;;  %v495_v57 = vpop.f32.mrf.mxu1  ;;  %v462_v10 = vadd.f32 %v2155_v4, %v2170_v54 }
 0x10c   : > { %2443 = vst [vmem:[#allocation29_spill] sm:$0xff] %v2222_v49  ;;  %2444 = vst [vmem:[#allocation30_spill] sm:$0xff] %v2225_v30  ;;  %v2228_v58 = vadd.f32 %v422_v45, %v283_v53  ;;  %v2231_v61 = vadd.f32 %v495_v57, %v2170_v54 }
 0x10d   : > { %v772_v62 = vpop.f32.mrf.mxu0  ;;  %v815_v56 = vpop.f32.mrf.mxu1 }
 0x10e   : > { %2445 = vst [vmem:[#allocation31_spill] sm:$0xff] %v2228_v58  ;;  %2446 = vst [vmem:[#allocation32_spill] sm:$0xff] %v2231_v61  ;;  %v824_v5 = vadd.f32 %v772_v62, %v387_v7 }
 0x10f   : > { %v774_v60 = vpop.f32.mrf.mxu0  ;;  %v817_v45 = vpop.f32.mrf.mxu1 }
 0x110   : > { %v1548_v49 = vmul.f32 -1.442695, %v824_v5  ;;  %v825_v21 = vadd.f32 %v774_v60, %v389_v0  ;;  %v460_v60 = vadd.f32 %v2151_v2, %v2168_v42  ;;  %v827_v53 = vadd.f32 %v817_v45, %v462_v10  ;;  %v567_v45 = vld [vmem:[#allocation4 + $0x8] sm:$0xff] }
 0x111   : > { %v776_v30 = vpop.f32.mrf.mxu0  ;;  %v819_v3 = vpop.f32.mrf.mxu1 }
 0x112   : > { %1668 = vpow2.f32 %v1548_v49  ;;  %v1550_v1 = vmul.f32 -1.442695, %v825_v21  ;;  %v828_v58 = vadd.f32 %v776_v30, %v391_v6  ;;  %v826_v49 = vadd.f32 %v815_v56, %v460_v60  ;;  %v887_v21 = vpop.permute.xlu0 %886 }
 0x113   : > { %v778_v63 = vpop.f32.mrf.mxu0  ;;  %v821_v41 = vpop.f32.mrf.mxu1  ;;  %vm891_vm10 = vcmp.eq.s32.totalorder %v887_v21, 1 }
 0x114   : > { %1670 = vpow2.f32 %v1550_v1  ;;  %v1549_v57 = vmul.f32 -1.442695, %v828_v58  ;;  %v829_v61 = vadd.f32 %v778_v63, %v393_v8  ;;  %v831_v5 = vadd.f32 %v821_v41, %v466_v37 }
 0x115   : > { %v1552_v58 = vmul.f32 -1.442695, %v827_v53 }
 0x116   : > { %1672 = vpow2.f32 %v1549_v57  ;;  %v1551_v7 = vmul.f32 -1.442695, %v829_v61  ;;  %v464_v61 = vadd.f32 %v2162_v11, %v2168_v42  ;;  %v1553_v62 = vmul.f32 -1.442695, %v831_v5 }
 0x118   : > { %1674 = vpow2.f32 %v1551_v7  ;;  %v830_v2 = vadd.f32 %v819_v3, %v464_v61  ;;  %v568_v3 = vld [vmem:[#allocation4] sm:$0xff] }
 0x119   : > { %1676 = vtanh.f32 %v826_v49  ;;  %v890_v49 = vpop.permute.xlu0 %889 }
 0x11a   : > { %vm892_vm11 = vcmp.eq.s32.totalorder %v890_v49, 1 }
 0x11f   : > { %v1669_v30 = vpop.eup %1668 }
 0x120   : > { %v838_v63 = vadd.f32 1.0, %v1669_v30 }
 0x121   : > { %v1671_v8 = vpop.eup %1670 }
 0x122   : > { %1678 = vrcp.f32 %v838_v63  ;;  %v850_v4 = vadd.f32 1.0, %v1671_v8 }
 0x123   : > { %v1673_v0 = vpop.eup %1672  ;;  %1680 = vpow2.f32 %v1552_v58 }
 0x124   : > { %1682 = vrcp.f32 %v850_v4  ;;  %v839_v6 = vadd.f32 1.0, %v1673_v0 }
 0x125   : > { %v1675_v40 = vpop.eup %1674  ;;  %1684 = vpow2.f32 %v1553_v62 }
 0x126   : > { %1686 = vrcp.f32 %v839_v6  ;;  %v851_v54 = vadd.f32 1.0, %v1675_v40  ;;  %v1677_v56 = vpop.eup %1676 }
 0x127   : > { %1688 = vtanh.f32 %v830_v2 }
 0x128   : > { %1690 = vrcp.f32 %v851_v54 }
 0x12f   : > { %v1679_v1 = vpop.eup %1678 }
 0x130   : > { %v1681_v11 = vpop.eup %1680  ;;  %v872_v10 = vmul.f32 %v1679_v1, %v1677_v56 }
 0x131   : > { %v1683_v42 = vpop.eup %1682  ;;  %v864_v37 = vadd.f32 1.0, %v1681_v11  ;;  %v2447_v11 = vmov 0  }
 0x132   : > { %v1685_v57 = vpop.eup %1684  ;;  %v870_v7 = vmul.f32 %v1683_v42, %v567_v45 }
 0x133   : > { %v1687_v41 = vpop.eup %1686  ;;  %v865_v30 = vadd.f32 1.0, %v1685_v57 }
 0x134   : > { %v1689_v60 = vpop.eup %1688  ;;  %v874_v53 = vadd.f32 %v872_v10, %v870_v7 }
 0x135   : > { %v1691_v5 = vpop.eup %1690  ;;  %v873_v8 = vmul.f32 %v1689_v60, %v1687_v41  ;;  %v2448_v60 = vld [vmem:[#allocation13_spill] sm:$0xff] }
 0x136   : > { %1692 = vtanh.f32 %v874_v53  ;;  %v2245_v58 = vsel %vm891_vm10, %v874_v53, %v567_v45  ;;  %v871_v63 = vmul.f32 %v1691_v5, %v568_v3 }
 0x137   : > { %1694 = vrcp.f32 %v864_v37 }
 0x138   : > { %v875_v61 = vadd.f32 %v873_v8, %v871_v63  ;;  %1696 = vrcp.f32 %v865_v30 }
 0x13a   : > { %1698 = vtanh.f32 %v875_v61  ;;  %v2247_v62 = vsel %vm892_vm11, %v875_v61, %v568_v3  ;;  %v2451_v61 = vld [vmem:[#allocation11_spill] sm:$0xff] }
 0x143   : > { %v1693_v4 = vpop.eup %1692 }
 0x144   : > { %v1695_v0 = vpop.eup %1694 }
 0x145   : > { %v1697_v2 = vpop.eup %1696  ;;  %v878_v6 = vmul.f32 %v1695_v0, %v1693_v4  ;;  %v2452_v0 = vld [vmem:[#allocation16_spill] sm:$0xff] }
 0x147   : > { %v1699_v40 = vpop.eup %1698  ;;  %v2251_v56 = vsel %vm891_vm10, %v878_v6, %v2084_v51 }
 0x148   : > { %v879_v54 = vmul.f32 %v1699_v40, %v1697_v2  ;;  %v2453_v40 = vld [vmem:[#allocation14_spill] sm:$0xff] }
 0x14a   : > { %v2254_v1 = vsel %vm892_vm11, %v879_v54, %v2086_v52 }
 0x14b   : > { %v905_v45 = vpack.c.bf16 %v2254_v1, %v2251_v56 }
 0x14d   : > { %939 = vmatmul.mubr.bf16.vlgmr.msra.gmra.mxu0 %v905_v45  ;;  %982 = vmatmul.mubr.bf16.vlgmr.msra.gmra.mxu1 %v905_v45 }
 0x14e   : > { %1076 = vmatpush1.bf16.msra.mxu0 %v1958_v13  ;;  %1119 = vmatpush1.bf16.msra.mxu1 %v1960_v14 }
 0x14f   : > { %1077 = vmatprep.subr.bf16.mxu0 %v1964_v15  ;;  %1120 = vmatprep.subr.bf16.mxu1 %v1966_v16 }
 0x150   : > { %1107 = vmatprep.mubr.bf16.mxu0 %v2447_v11  ;;  %1150 = vmatprep.mubr.bf16.mxu1 %v2447_v11 }
 0x152   : > { %1078 = vmatpush1.bf16.msra.mxu0 %v1968_v17  ;;  %1121 = vmatpush1.bf16.msra.mxu1 %v1973_v18 }
 0x153   : > { %1079 = vmatprep.subr.bf16.mxu0 %v1977_v19  ;;  %1122 = vmatprep.subr.bf16.mxu1 %v1981_v20 }
 0x156   : > { %1080 = vmatpush1.bf16.msra.mxu0 %v1986_v22  ;;  %1123 = vmatpush1.bf16.msra.mxu1 %v1990_v23 }
 0x157   : > { %1081 = vmatprep.subr.bf16.mxu0 %v1992_v24  ;;  %1124 = vmatprep.subr.bf16.mxu1 %v1996_v25 }
 0x15a   : > { %1082 = vmatpush1.bf16.msra.mxu0 %v2002_v26  ;;  %1125 = vmatpush1.bf16.msra.mxu1 %v2004_v27 }
 0x15b   : > { %1083 = vmatprep.subr.bf16.mxu0 %v2006_v28  ;;  %1126 = vmatprep.subr.bf16.mxu1 %v2010_v29 }
 0x15e   : > { %1084 = vmatpush1.bf16.msra.mxu0 %v2015_v31  ;;  %1127 = vmatpush1.bf16.msra.mxu1 %v2017_v32 }
 0x15f   : > { %1085 = vmatprep.subr.bf16.mxu0 %v2021_v33  ;;  %1128 = vmatprep.subr.bf16.mxu1 %v2025_v34 }
 0x162   : > { %1086 = vmatpush1.bf16.msra.mxu0 %v2032_v35  ;;  %1129 = vmatpush1.bf16.msra.mxu1 %v2036_v36 }
 0x163   : > { %1087 = vmatprep.subr.bf16.mxu0 %v2041_v38  ;;  %1130 = vmatprep.subr.bf16.mxu1 %v2043_v39 }
 0x166   : > { %1088 = vmatpush1.bf16.msra.mxu0 %v2061_v43  ;;  %1131 = vmatpush1.bf16.msra.mxu1 %v2063_v44 }
 0x167   : > { %1089 = vmatprep.subr.bf16.mxu0 %v2069_v46  ;;  %1132 = vmatprep.subr.bf16.mxu1 %v2071_v47 }
 0x16a   : > { %1090 = vmatpush1.bf16.msra.mxu0 %v2076_v48  ;;  %1133 = vmatpush1.bf16.msra.mxu1 %v2082_v50 }
 0x16b   : > { %1244 = vmatprep.subr.bf16.mxu0 %v1953_v9  ;;  %1287 = vmatprep.subr.bf16.mxu1 %v1956_v12  ;;  %v2449_v9 = vld [vmem:[#allocation15_spill] sm:$0xff] }
 0x20d   : > { %v940_v51 = vpop.f32.mrf.mxu0  ;;  %v983_v21 = vpop.f32.mrf.mxu1 }
 0x20e   : > { %v992_v52 = vadd.f32 %v940_v51, %v2172_v55  ;;  %v2450_v55 = vld [vmem:[#allocation12_spill] sm:$0xff] }
 0x20f   : > { %v942_v42 = vpop.f32.mrf.mxu0  ;;  %v985_v3 = vpop.f32.mrf.mxu1 }
 0x210   : > { %v1554_v57 = vmul.f32 -1.442695, %v992_v52  ;;  %v993_v7 = vadd.f32 %v942_v42, %v2177_v59  ;;  %v995_v63 = vadd.f32 %v985_v3, %v2450_v55  ;;  %v994_v59 = vadd.f32 %v983_v21, %v2451_v61 }
 0x211   : > { %v944_v10 = vpop.f32.mrf.mxu0  ;;  %v987_v12 = vpop.f32.mrf.mxu1 }
 0x212   : > { %1700 = vpow2.f32 %v1554_v57  ;;  %v1556_v41 = vmul.f32 -1.442695, %v993_v7  ;;  %v996_v37 = vadd.f32 %v944_v10, %v2448_v60  ;;  %v1558_v4 = vmul.f32 -1.442695, %v995_v63  ;;  %v1056_v60 = vpop.permute.xlu1 %1055 }
 0x213   : > { %v946_v53 = vpop.f32.mrf.mxu0  ;;  %v989_v8 = vpop.f32.mrf.mxu1  ;;  %v998_v54 = vadd.f32 %v987_v12, %v2453_v40  ;;  %vm1060_vm12 = vcmp.eq.s32.totalorder %v1056_v60, 1 }
 0x214   : > { %1702 = vpow2.f32 %v1556_v41  ;;  %v1555_v49 = vmul.f32 -1.442695, %v996_v37  ;;  %v997_v5 = vadd.f32 %v946_v53, %v2449_v9  ;;  %v999_v2 = vadd.f32 %v989_v8, %v2452_v0 }
 0x216   : > { %1704 = vpow2.f32 %v1555_v49  ;;  %v1557_v30 = vmul.f32 -1.442695, %v997_v5  ;;  %v1559_v52 = vmul.f32 -1.442695, %v999_v2  ;;  %v1059_v8 = vpop.permute.xlu1 %1058 }
 0x217   : > { %vm1061_vm13 = vcmp.eq.s32.totalorder %v1059_v8, 1 }
 0x218   : > { %1706 = vpow2.f32 %v1557_v30 }
 0x219   : > { %1708 = vtanh.f32 %v994_v59 }
 0x21a   : > { %1710 = vpow2.f32 %v1558_v4 }
 0x21f   : > { %v1701_v6 = vpop.eup %1700 }
 0x220   : > { %v1006_v45 = vadd.f32 1.0, %v1701_v6 }
 0x221   : > { %v1703_v51 = vpop.eup %1702 }
 0x222   : > { %1712 = vrcp.f32 %v1006_v45  ;;  %v1018_v42 = vadd.f32 1.0, %v1703_v51 }
 0x223   : > { %v1705_v57 = vpop.eup %1704  ;;  %1714 = vtanh.f32 %v998_v54 }
 0x224   : > { %1716 = vrcp.f32 %v1018_v42  ;;  %v1007_v7 = vadd.f32 1.0, %v1705_v57 }
 0x225   : > { %v1707_v10 = vpop.eup %1706  ;;  %1718 = vpow2.f32 %v1559_v52 }
 0x226   : > { %1720 = vrcp.f32 %v1007_v7  ;;  %v1019_v21 = vadd.f32 1.0, %v1707_v10  ;;  %v1709_v41 = vpop.eup %1708 }
 0x227   : > { %v1711_v3 = vpop.eup %1710 }
 0x228   : > { %1722 = vrcp.f32 %v1019_v21  ;;  %v1032_v5 = vadd.f32 1.0, %v1711_v3 }
 0x22a   : > { %1724 = vrcp.f32 %v1032_v5 }
 0x22f   : > { %v1713_v37 = vpop.eup %1712 }
 0x230   : > { %v1715_v53 = vpop.eup %1714  ;;  %v1040_v49 = vmul.f32 %v1713_v37, %v1709_v41 }
 0x231   : > { %v1717_v9 = vpop.eup %1716 }
 0x232   : > { %v1719_v12 = vpop.eup %1718  ;;  %v1038_v30 = vmul.f32 %v1717_v9, %v2245_v58 }
 0x233   : > { %v1721_v55 = vpop.eup %1720  ;;  %v1033_v4 = vadd.f32 1.0, %v1719_v12 }
 0x234   : > { %v1042_v63 = vadd.f32 %v1040_v49, %v1038_v30  ;;  %v1041_v61 = vmul.f32 %v1721_v55, %v1715_v53 }
 0x235   : > { %v1723_v59 = vpop.eup %1722 }
 0x236   : > { %1726 = vtanh.f32 %v1042_v63  ;;  %v2303_v0 = vsel %vm1060_vm12, %v1042_v63, %v2245_v58  ;;  %v1039_v2 = vmul.f32 %v1723_v59, %v2247_v62 }
 0x237   : > { %1728 = vrcp.f32 %v1033_v4  ;;  %v1725_v54 = vpop.eup %1724 }
 0x238   : > { %v1043_v6 = vadd.f32 %v1041_v61, %v1039_v2  ;;  %v1225_v61 = vpop.permute.xlu0 %1224 }
 0x239   : > { %vm1229_vm14 = vcmp.eq.s32.totalorder %v1225_v61, 1 }
 0x23a   : > { %1730 = vtanh.f32 %v1043_v6  ;;  %v2307_v40 = vsel %vm1061_vm13, %v1043_v6, %v2247_v62 }
 0x243   : > { %v1727_v45 = vpop.eup %1726 }
 0x244   : > { %v1046_v51 = vmul.f32 %v1727_v45, %v1725_v54  ;;  %v1729_v52 = vpop.eup %1728 }
 0x246   : > { %v2311_v7 = vsel %vm1060_vm12, %v1046_v51, %v2251_v56  ;;  %v1228_v51 = vpop.permute.xlu1 %1227 }
 0x247   : > { %v1731_v42 = vpop.eup %1730  ;;  %vm1230_vm15 = vcmp.eq.s32.totalorder %v1228_v51, 1 }
 0x248   : > { %v1047_v57 = vmul.f32 %v1731_v42, %v1729_v52 }
 0x24a   : > { %v2314_v58 = vsel %vm1061_vm13, %v1047_v57, %v2254_v1 }
 0x24b   : > { %v1074_v10 = vpack.c.bf16 %v2314_v58, %v2311_v7 }
 0x24d   : > { %1108 = vmatmul.mubr.bf16.vlgmr.msra.gmra.mxu0 %v1074_v10  ;;  %1151 = vmatmul.mubr.bf16.vlgmr.msra.gmra.mxu1 %v1074_v10 }
 0x24e   : > { %1245 = vmatpush1.bf16.msra.mxu0 %v1958_v13  ;;  %1288 = vmatpush1.bf16.msra.mxu1 %v1960_v14  ;;  %v2454_v14 = vld [vmem:[#allocation17_spill] sm:$0xff] }
 0x24f   : > { %1246 = vmatprep.subr.bf16.mxu0 %v1964_v15  ;;  %1289 = vmatprep.subr.bf16.mxu1 %v1966_v16 }
 0x250   : > { %1276 = vmatprep.mubr.bf16.mxu0 %v2447_v11  ;;  %1319 = vmatprep.mubr.bf16.mxu1 %v2447_v11 }
 0x252   : > { %1247 = vmatpush1.bf16.msra.mxu0 %v1968_v17  ;;  %1290 = vmatpush1.bf16.msra.mxu1 %v1973_v18 }
 0x253   : > { %1248 = vmatprep.subr.bf16.mxu0 %v1977_v19  ;;  %1291 = vmatprep.subr.bf16.mxu1 %v1981_v20  ;;  %v2455_v19 = vld [vmem:[#allocation19_spill] sm:$0xff] }
 0x256   : > { %1249 = vmatpush1.bf16.msra.mxu0 %v1986_v22  ;;  %1292 = vmatpush1.bf16.msra.mxu1 %v1990_v23 }
 0x257   : > { %1250 = vmatprep.subr.bf16.mxu0 %v1992_v24  ;;  %1293 = vmatprep.subr.bf16.mxu1 %v1996_v25  ;;  %v2456_v25 = vld [vmem:[#allocation21_spill] sm:$0xff] }
 0x25a   : > { %1251 = vmatpush1.bf16.msra.mxu0 %v2002_v26  ;;  %1294 = vmatpush1.bf16.msra.mxu1 %v2004_v27 }
 0x25b   : > { %1252 = vmatprep.subr.bf16.mxu0 %v2006_v28  ;;  %1295 = vmatprep.subr.bf16.mxu1 %v2010_v29  ;;  %v2457_v29 = vld [vmem:[#allocation23_spill] sm:$0xff] }
 0x25e   : > { %1253 = vmatpush1.bf16.msra.mxu0 %v2015_v31  ;;  %1296 = vmatpush1.bf16.msra.mxu1 %v2017_v32 }
 0x25f   : > { %1254 = vmatprep.subr.bf16.mxu0 %v2021_v33  ;;  %1297 = vmatprep.subr.bf16.mxu1 %v2025_v34  ;;  %v2458_v34 = vld [vmem:[#allocation20_spill] sm:$0xff] }
 0x262   : > { %1255 = vmatpush1.bf16.msra.mxu0 %v2032_v35  ;;  %1298 = vmatpush1.bf16.msra.mxu1 %v2036_v36 }
 0x263   : > { %1256 = vmatprep.subr.bf16.mxu0 %v2041_v38  ;;  %1299 = vmatprep.subr.bf16.mxu1 %v2043_v39  ;;  %v2459_v38 = vld [vmem:[#allocation18_spill] sm:$0xff] }
 0x266   : > { %1257 = vmatpush1.bf16.msra.mxu0 %v2061_v43  ;;  %1300 = vmatpush1.bf16.msra.mxu1 %v2063_v44  ;;  %v2460_v44 = vld [vmem:[#allocation24_spill] sm:$0xff] }
 0x267   : > { %1258 = vmatprep.subr.bf16.mxu0 %v2069_v46  ;;  %1301 = vmatprep.subr.bf16.mxu1 %v2071_v47 }
 0x26a   : > { %1259 = vmatpush1.bf16.msra.mxu0 %v2076_v48  ;;  %1302 = vmatpush1.bf16.msra.mxu1 %v2082_v50  ;;  %v2461_v48 = vld [vmem:[#allocation22_spill] sm:$0xff] }
 0x30d   : > { %v1109_v13 = vpop.f32.mrf.mxu0  ;;  %v1152_v16 = vpop.f32.mrf.mxu1 }
 0x30e   : > { %v1161_v15 = vadd.f32 %v1109_v13, %v2454_v14  ;;  %v1163_v39 = vadd.f32 %v1152_v16, %v2459_v38  ;;  %v2466_v38 = vld [vmem:[#allocation28_spill] sm:$0xff] }
 0x30f   : > { %v1111_v17 = vpop.f32.mrf.mxu0  ;;  %v1154_v24 = vpop.f32.mrf.mxu1 }
 0x310   : > { %v1560_v18 = vmul.f32 -1.442695, %v1161_v15  ;;  %v1162_v20 = vadd.f32 %v1111_v17, %v2455_v19  ;;  %v1164_v35 = vadd.f32 %v1154_v24, %v2458_v34  ;;  %v2462_v19 = vld [vmem:[#allocation25_spill] sm:$0xff] }
 0x311   : > { %v1113_v22 = vpop.f32.mrf.mxu0  ;;  %v1156_v32 = vpop.f32.mrf.mxu1 }
 0x312   : > { %1732 = vpow2.f32 %v1560_v18  ;;  %v1562_v23 = vmul.f32 -1.442695, %v1162_v20  ;;  %v1165_v26 = vadd.f32 %v1113_v22, %v2456_v25  ;;  %v1564_v43 = vmul.f32 -1.442695, %v1164_v35  ;;  %v2463_v25 = vld [vmem:[#allocation27_spill] sm:$0xff] }
 0x313   : > { %v1115_v27 = vpop.f32.mrf.mxu0  ;;  %v1158_v36 = vpop.f32.mrf.mxu1  ;;  %v1167_v50 = vadd.f32 %v1156_v32, %v2461_v48  ;;  %v2468_v48 = vld [vmem:[#allocation32_spill] sm:$0xff] }
 0x314   : > { %1734 = vpow2.f32 %v1562_v23  ;;  %v1561_v28 = vmul.f32 -1.442695, %v1165_v26  ;;  %v1166_v31 = vadd.f32 %v1115_v27, %v2457_v29  ;;  %v1168_v46 = vadd.f32 %v1158_v36, %v2460_v44  ;;  %v2464_v29 = vld [vmem:[#allocation29_spill] sm:$0xff]  ;;  %v2467_v44 = vld [vmem:[#allocation26_spill] sm:$0xff] }
 0x316   : > { %1736 = vpow2.f32 %v1561_v28  ;;  %v1563_v33 = vmul.f32 -1.442695, %v1166_v31  ;;  %v1565_v1 = vmul.f32 -1.442695, %v1168_v46 }
 0x318   : > { %1738 = vpow2.f32 %v1563_v33  ;;  %v2465_v33 = vld [vmem:[#allocation31_spill] sm:$0xff] }
 0x319   : > { %1740 = vtanh.f32 %v1163_v39 }
 0x31a   : > { %1742 = vpow2.f32 %v1564_v43 }
 0x31f   : > { %v1733_v47 = vpop.eup %1732 }
 0x320   : > { %v1175_v62 = vadd.f32 1.0, %v1733_v47 }
 0x321   : > { %v1735_v56 = vpop.eup %1734 }
 0x322   : > { %1744 = vrcp.f32 %v1175_v62  ;;  %v1187_v11 = vadd.f32 1.0, %v1735_v56  ;;  %v2469_v56 = vld [vmem:[#allocation30_spill] sm:$0xff] }
 0x323   : > { %v1737_v21 = vpop.eup %1736  ;;  %1746 = vtanh.f32 %v1167_v50 }
 0x324   : > { %1748 = vrcp.f32 %v1187_v11  ;;  %v1176_v41 = vadd.f32 1.0, %v1737_v21 }
 0x325   : > { %v1739_v3 = vpop.eup %1738  ;;  %1750 = vpow2.f32 %v1565_v1 }
 0x326   : > { %1752 = vrcp.f32 %v1176_v41  ;;  %v1188_v60 = vadd.f32 1.0, %v1739_v3  ;;  %v1741_v37 = vpop.eup %1740 }
 0x327   : > { %v1743_v53 = vpop.eup %1742 }
 0x328   : > { %1754 = vrcp.f32 %v1188_v60  ;;  %v1201_v30 = vadd.f32 1.0, %v1743_v53 }
 0x32a   : > { %1756 = vrcp.f32 %v1201_v30 }
 0x32f   : > { %v1745_v49 = vpop.eup %1744 }
 0x330   : > { %v1747_v9 = vpop.eup %1746  ;;  %v1209_v5 = vmul.f32 %v1745_v49, %v1741_v37 }
 0x331   : > { %v1749_v12 = vpop.eup %1748 }
 0x332   : > { %v1751_v55 = vpop.eup %1750  ;;  %v1207_v63 = vmul.f32 %v1749_v12, %v2303_v0 }
 0x333   : > { %v1753_v8 = vpop.eup %1752  ;;  %v1202_v6 = vadd.f32 1.0, %v1751_v55 }
 0x334   : > { %v1211_v59 = vadd.f32 %v1209_v5, %v1207_v63  ;;  %v1210_v4 = vmul.f32 %v1753_v8, %v1747_v9 }
 0x335   : > { %v1755_v2 = vpop.eup %1754 }
 0x336   : > { %1758 = vtanh.f32 %v1211_v59  ;;  %v1208_v54 = vmul.f32 %v1755_v2, %v2307_v40  ;;  %v2362_v45 = vsel %vm1229_vm14, %v1211_v59, %v2303_v0  ;;  %v1394_v59 = vpop.permute.xlu0 %1393 }
 0x337   : > { %1760 = vrcp.f32 %v1202_v6  ;;  %v1757_v57 = vpop.eup %1756  ;;  %vm1398_vm0 = vcmp.eq.s32.totalorder %v1394_v59, 1 }
 0x338   : > { %v1212_v52 = vadd.f32 %v1210_v4, %v1208_v54 }
 0x33a   : > { %1762 = vtanh.f32 %v1212_v52  ;;  %v2365_v42 = vsel %vm1230_vm15, %v1212_v52, %v2307_v40 }
 0x343   : > { %v1759_v10 = vpop.eup %1758 }
 0x344   : > { %v1215_v13 = vmul.f32 %v1759_v10, %v1757_v57  ;;  %v1761_v14 = vpop.eup %1760  ;;  %v1397_v57 = vpop.permute.xlu1 %1396 }
 0x345   : > { %vm1399_vm1 = vcmp.eq.s32.totalorder %v1397_v57, 1 }
 0x346   : > { %v2369_v17 = vsel %vm1229_vm14, %v1215_v13, %v2311_v7 }
 0x347   : > { %v1763_v15 = vpop.eup %1762 }
 0x348   : > { %v1216_v16 = vmul.f32 %v1763_v15, %v1761_v14 }
 0x34a   : > { %v2372_v0 = vsel %vm1230_vm15, %v1216_v16, %v2314_v58 }
 0x34b   : > { %v1243_v18 = vpack.c.bf16 %v2372_v0, %v2369_v17 }
 0x34d   : > { %1277 = vmatmul.mubr.bf16.vlgmr.msra.gmra.mxu0 %v1243_v18  ;;  %1320 = vmatmul.mubr.bf16.vlgmr.msra.gmra.mxu1 %v1243_v18 }
 0x40d   : > { %v1278_v40 = vpop.f32.mrf.mxu0  ;;  %v1321_v22 = vpop.f32.mrf.mxu1 }
 0x40e   : > { %v1330_v20 = vadd.f32 %v1278_v40, %v2462_v19  ;;  %v1332_v46 = vadd.f32 %v1321_v22, %v2467_v44 }
 0x40f   : > { %v1280_v23 = vpop.f32.mrf.mxu0  ;;  %v1323_v28 = vpop.f32.mrf.mxu1 }
 0x410   : > { %v1566_v24 = vmul.f32 -1.442695, %v1330_v20  ;;  %v1331_v26 = vadd.f32 %v1280_v23, %v2463_v25  ;;  %v1333_v39 = vadd.f32 %v1323_v28, %v2466_v38 }
 0x411   : > { %v1282_v27 = vpop.f32.mrf.mxu0  ;;  %v1325_v35 = vpop.f32.mrf.mxu1 }
 0x412   : > { %1764 = vpow2.f32 %v1566_v24  ;;  %v1568_v7 = vmul.f32 -1.442695, %v1331_v26  ;;  %v1334_v58 = vadd.f32 %v1282_v27, %v2464_v29  ;;  %v1570_v47 = vmul.f32 -1.442695, %v1333_v39 }
 0x413   : > { %v1284_v31 = vpop.f32.mrf.mxu0  ;;  %v1327_v43 = vpop.f32.mrf.mxu1  ;;  %v1336_v1 = vadd.f32 %v1325_v35, %v2469_v56 }
 0x414   : > { %1766 = vpow2.f32 %v1568_v7  ;;  %v1567_v32 = vmul.f32 -1.442695, %v1334_v58  ;;  %v1335_v34 = vadd.f32 %v1284_v31, %v2465_v33  ;;  %v1337_v50 = vadd.f32 %v1327_v43, %v2468_v48 }
 0x416   : > { %1768 = vpow2.f32 %v1567_v32  ;;  %v1569_v36 = vmul.f32 -1.442695, %v1335_v34  ;;  %v1571_v41 = vmul.f32 -1.442695, %v1337_v50 }
 0x418   : > { %1770 = vpow2.f32 %v1569_v36 }
 0x419   : > { %1772 = vtanh.f32 %v1332_v46 }
 0x41a   : > { %1774 = vpow2.f32 %v1570_v47 }
 0x41f   : > { %v1765_v62 = vpop.eup %1764 }
 0x420   : > { %v1344_v11 = vadd.f32 1.0, %v1765_v62 }
 0x421   : > { %v1767_v21 = vpop.eup %1766 }
 0x422   : > { %1776 = vrcp.f32 %v1344_v11  ;;  %v1356_v3 = vadd.f32 1.0, %v1767_v21 }
 0x423   : > { %v1769_v60 = vpop.eup %1768  ;;  %1778 = vtanh.f32 %v1336_v1 }
 0x424   : > { %1780 = vrcp.f32 %v1356_v3  ;;  %v1345_v37 = vadd.f32 1.0, %v1769_v60 }
 0x425   : > { %v1771_v53 = vpop.eup %1770  ;;  %1782 = vpow2.f32 %v1571_v41 }
 0x426   : > { %1784 = vrcp.f32 %v1345_v37  ;;  %v1357_v49 = vadd.f32 1.0, %v1771_v53  ;;  %v1773_v9 = vpop.eup %1772 }
 0x427   : > { %v1775_v5 = vpop.eup %1774 }
 0x428   : > { %1786 = vrcp.f32 %v1357_v49  ;;  %v1370_v8 = vadd.f32 1.0, %v1775_v5 }
 0x42a   : > { %1788 = vrcp.f32 %v1370_v8 }
 0x42f   : > { %v1777_v12 = vpop.eup %1776 }
 0x430   : > { %v1779_v30 = vpop.eup %1778  ;;  %v1378_v55 = vmul.f32 %v1777_v12, %v1773_v9 }
 0x431   : > { %v1781_v63 = vpop.eup %1780 }
 0x432   : > { %v1783_v61 = vpop.eup %1782  ;;  %v1376_v4 = vmul.f32 %v1781_v63, %v2362_v45 }
 0x433   : > { %v1785_v2 = vpop.eup %1784  ;;  %v1371_v52 = vadd.f32 1.0, %v1783_v61 }
 0x434   : > { %v1380_v6 = vadd.f32 %v1378_v55, %v1376_v4  ;;  %v1379_v54 = vmul.f32 %v1785_v2, %v1779_v30 }
 0x435   : > { %v1787_v51 = vpop.eup %1786 }
 0x436   : > { %1790 = vtanh.f32 %v1380_v6  ;;  %v1402_v10 = vsel %vm1398_vm0, %v1380_v6, %v2362_v45  ;;  %v1377_v13 = vmul.f32 %v1787_v51, %v2365_v42 }
 0x437   : > { %1406 = vst [vmem:[#allocation4 + $0x8] sm:$0xff] %v1402_v10  ;;  %1792 = vrcp.f32 %v1371_v52  ;;  %v1789_v16 = vpop.eup %1788 }
 0x438   : > { %v1381_v14 = vadd.f32 %v1379_v54, %v1377_v13 }
 0x43a   : > { %1794 = vtanh.f32 %v1381_v14  ;;  %v1403_v15 = vsel %vm1399_vm1, %v1381_v14, %v2365_v42 }
 0x43b   : > { %1407 = vst [vmem:[#allocation4] sm:$0xff] %v1403_v15 }
 0x443   : > { %v1791_v18 = vpop.eup %1790 }
 0x444   : > { %v1384_v40 = vmul.f32 %v1791_v18, %v1789_v16  ;;  %v1793_v19 = vpop.eup %1792 }
 0x446   : > { %v1400_v20 = vsel %vm1398_vm0, %v1384_v40, %v2369_v17 }
 0x447   : > { %v1795_v22 = vpop.eup %1794  ;;  %1404 = vst [vmem:[#allocation3] sm:$0xff] %v1400_v20  ;;  %1411 = sbr.rel (%p1572_p2) target bundleno = 1233 (0x4d1), region = 56 }
 0x448   : > { %v1385_v45 = vmul.f32 %v1795_v22, %v1793_v19 }
 0x44a   : > { %v1401_v23 = vsel %vm1399_vm1, %v1385_v45, %v2372_v0 }
 0x44b   : > { %1405 = vst [vmem:[#allocation3 + $0x8] sm:$0xff] %v1401_v23 }
 0x44c   : > { %v1412_v42 = vld [vmem:[%s2419_s5] sm:$0xff]  ;;  %v1868_v24 = vmov 0   ;;  %v1413_v17 = vld [vmem:[%s2419_s5 + $0x8] sm:$0xff] }
 0x44d   : > { %1796 = vset.pattern.permute.xlu0 %v1868_v24 }
 0x44e   : > { %1416 = vperm.xlu0 %1796, %v1412_v42  }
 0x452   : > { %1421 = vperm.xlu0 %1796, %v1413_v17  }
 0x4c9   : > { %v1417_v25 = vpop.permute.xlu0 %1416 }
 0x4ca   : > { %v1424_v26 = vmul.f32 %v1417_v25, %v1400_v20 }
 0x4cc   : > { %1426 = vst [vmem:[#allocation8] sm:$0xff] %v1424_v26 }
 0x4cd   : > { %v1422_v0 = vpop.permute.xlu0 %1421 }
 0x4ce   : > { %v1425_v27 = vmul.f32 %v1422_v0, %v1401_v23 }
 0x4d0   : > { %1427 = vst [vmem:[#allocation8 + $0x8] sm:$0xff] %v1425_v27 }
 0x4d1 PF: > { %p1591_p3 = scmp.eq.s32.totalorder %s1913_s22, 1  ;;  %s1869_s8 = smov [#allocation8]  }
 0x4d2   : > { %s1434_s9 = sshll.u32 %s1869_s8, 4  ;;  %s1435_s9 = int_to_ptr.vmem [resolvable:$true] %s1434_s9 }
 0x4d3   : > { %s1823_s10 = scalar_lea.vmem %s1435_s9, 256  ;;  %p1830_p7 = scmp.lt.s32.totalorder %s1435_s9, %s1435_s9 }
 0x4d4   : > { %p1824_p4 = scmp.ne.s32.totalorder %s1435_s9, %s1823_s10  ;;  %p1831_p8 = scmp.lt.s32.totalorder %s1823_s10, %s1823_s10 }
 0x4d6   : > { %p1825_p5 = pnand %p1824_p4, %p1591_p3  ;;  %p1832_p9 = por %p1831_p8, %p1830_p7 }
 0x4d8   : > { %p1826_p6 = pneg %p1825_p5 }
 0x4da   : > { %p1833_p10 = pnand %p1832_p9, %p1826_p6 }
 0x4dc   : > { %1836 = shalt.err (!%p1833_p10)
}
 0x4dd   : > { %s1870_s11 = smov 128   ;;  %s1871_s12 = smov 8  }
 0x4de   : > { %1582 = dma.vmem_to_hbm [thread:$0]  (%p1591_p3), %s1435_s9, 256, %s2420_s6, [#allocation7], %s1870_s11, %s1870_s11, %s1871_s12  }
 0x4df   : > { %1856 = dma.done.wait (%p1591_p3), [#allocation7], 256  }
 0x4e0   : > { %1858 = vsyncadd (%p1591_p3), [#allocation7], 4294967040 }
 0x4e1 PF: > { %s18_s21 = sadd.s32 1, %s1861_s21  }
 0x4e2   : > { %p15_p11 = scmp.ge.s32.totalorder %s18_s21, 4  }
 0x4e4   :  { %17 = sbr.rel (!%p15_p11) target bundleno = 2 (0x2), region = 84 }
 0x4e9   :  { %1450 = vsyncpa [#allocation6], 1 }
 0x4ea   :  { %1452 = vsyncpa [#allocation6 + $0x1], 1 }
 0x4eb   :  { %1453 = vsyncpa [#allocation7], 1 }
 0x4ec   :  { %1455 = vsyncpa [#allocation7 + $0x1], 1 }

</bundles_post_ra>
